<compile_context>
chip_gen: v7x
topology: tpu7x:2x2x1
jax: 0.10.0
libtpu: 0.0.40
codegen_flags: <defaults>
</compile_context>

<pallas_src>
import math

import jax
import jax.numpy as jnp
from jax import lax
from jax.experimental import pallas as pl
from jax.experimental.pallas import tpu as pltpu


_FUSED_MAX_ROWS = 1024  # above this the one-hot gather loses to streaming rows


def _round_up(x, m):
    return ((x + m - 1) // m) * m


# ---------------------------------------------------------------------------
# Kernels
# ---------------------------------------------------------------------------

def _complex_score(hr, hi, tr, ti, rr, ri):
    """Re/Im of sum_d h * conj(r) * t, each of shape (TB, 1)."""
    # h * conj(r) = (hr*rr + hi*ri) + i*(hi*rr - hr*ri)
    a = hr * rr + hi * ri
    b = hi * rr - hr * ri
    # keepdims -> results stay sublane-oriented; no lane relayout before store.
    re = jnp.sum(a * tr - b * ti, axis=1, keepdims=True)
    im = jnp.sum(a * ti + b * tr, axis=1, keepdims=True)
    return re, im


def _onehot_gather(idx_col, re_ref, im_ref):
    """Exact row gather from VMEM-resident (N, D) tables via one-hot matmul.

    idx_col: (TB, 1) int32.  The MXU is otherwise idle, so for small N this is
    the cheapest gather and keeps gathered-row traffic entirely out of HBM.
    """
    n = re_ref.shape[0]
    iota = lax.broadcasted_iota(jnp.int32, (idx_col.shape[0], n), 1)
    oh = (idx_col == iota).astype(jnp.float32)            # (TB, N), exact 0/1
    re = jnp.dot(oh, re_ref[...], preferred_element_type=jnp.float32)
    im = jnp.dot(oh, im_ref[...], preferred_element_type=jnp.float32)
    return re, im


def _fused_kernel(h_idx_ref, t_idx_ref, r_idx_ref,
                  ent_re_ref, ent_im_ref, rel_re_ref, rel_im_ref,
                  re_ref, im_ref):
    hr, hi = _onehot_gather(h_idx_ref[...], ent_re_ref, ent_im_ref)
    tr, ti = _onehot_gather(t_idx_ref[...], ent_re_ref, ent_im_ref)
    rr, ri = _onehot_gather(r_idx_ref[...], rel_re_ref, rel_im_ref)
    re, im = _complex_score(hr, hi, tr, ti, rr, ri)
    re_ref[...] = re
    im_ref[...] = im


def _streaming_kernel(hr_ref, hi_ref, tr_ref, ti_ref, rr_ref, ri_ref,
                      re_ref, im_ref):
    re, im = _complex_score(hr_ref[...], hi_ref[...], tr_ref[...], ti_ref[...],
                            rr_ref[...], ri_ref[...])
    re_ref[...] = re
    im_ref[...] = im


# ---------------------------------------------------------------------------
# Wrapper
# ---------------------------------------------------------------------------

def _vmem_capacity_bytes():
    try:
        info = pltpu.get_tpu_info()
        cap = getattr(info, "vmem_capacity_bytes", None)
        if cap:
            return int(cap)
    except Exception:
        pass
    return 64 * 1024 * 1024  # conservative: v7x physical VMEM per TensorCore


def _pick_tb(batch, footprint_fn, budget):
    tb = 4096
    while tb > 128 and footprint_fn(tb) > budget:
        tb //= 2
    b_ceil = _round_up(max(batch, 1), 128)
    tb = min(tb, b_ceil)
    # v7x megacore: keep at least 2 grid blocks whenever the batch allows it,
    # so the "parallel" batch axis can feed both TensorCores.
    if b_ceil >= 256 and tb >= b_ceil:
        tb = _round_up(b_ceil // 2, 128)
    return tb


def kg_complex_scores(entity_table, relation_table, heads, tails, relations,
                      *, force_streaming=False):
    """Pallas implementation of KGEmbeddingModule.forward.

    entity_table:   (num_entities, 2*D) float32   (real | imag halves)
    relation_table: (num_relations, 2*D) float32
    heads/tails/relations: (B,) integer indices
    returns: (B,) complex64 scores
    """
    B = heads.shape[0]
    num_entities, two_d = entity_table.shape
    num_relations, two_d_r = relation_table.shape
    assert two_d % 2 == 0 and two_d_r == two_d, "table width must be 2*D (re|im)"
    assert num_entities > 0 and num_relations > 0
    d = two_d // 2

    heads = heads.astype(jnp.int32)
    tails = tails.astype(jnp.int32)
    relations = relations.astype(jnp.int32)

    # Pre-split real | imag once in the wrapper so every kernel operand is a
    # clean (rows, D) slab — no tile-cutting [:, :d] slices inside blocks.
    ent_re, ent_im = entity_table[:, :d], entity_table[:, d:]
    rel_re, rel_im = relation_table[:, :d], relation_table[:, d:]

    f32 = 4
    cap = _vmem_capacity_bytes()
    vmem_limit = min(int(cap * 0.75), 96 * 1024 * 1024)  # v7x ~48M, v5e/v6e 96M
    budget = vmem_limit // 2                              # pipeline + temps target

    fused = (not force_streaming
             and num_entities <= _FUSED_MAX_ROWS
             and num_relations <= _FUSED_MAX_ROWS)
    if fused:
        ne_pad = _round_up(num_entities, 128)   # aligned one-hot contraction dim
        nr_pad = _round_up(num_relations, 128)
        resident = 2 * 2 * (ne_pad + nr_pad) * d * f32   # 4 tables, 2 buffers
        fused = resident <= budget // 4

    if fused:
        def footprint(tb):
            io = 2 * (3 * tb * 4 + 2 * tb * f32)             # idx in + outs
            onehot = 2 * tb * max(ne_pad, nr_pad) * f32      # one-hot + temp
            rows_and_temps = 12 * tb * d * f32               # gathered rows, a, b
            return resident + io + onehot + rows_and_temps
    else:
        def footprint(tb):
            io = 2 * (6 * tb * d * f32 + 2 * tb * f32)       # streamed rows + outs
            temps = 8 * tb * d * f32
            return io + temps

    tb = _pick_tb(B, footprint, budget)
    b_pad = _round_up(B, tb)
    if b_pad != B:
        pad = (0, b_pad - B)
        heads = jnp.pad(heads, pad)        # index 0 is valid; rows discarded below
        tails = jnp.pad(tails, pad)
        relations = jnp.pad(relations, pad)

    grid = (b_pad // tb,)
    out_spec = pl.BlockSpec((tb, 1), lambda i: (i, 0))
    out_shapes = (jax.ShapeDtypeStruct((b_pad, 1), jnp.float32),
                  jax.ShapeDtypeStruct((b_pad, 1), jnp.float32))
    cparams = pltpu.CompilerParams(dimension_semantics=("parallel",),
                                   vmem_limit_bytes=int(vmem_limit))

    if fused:
        def pad_rows(x, n):
            return jnp.pad(x, ((0, n - x.shape[0]), (0, 0)))
        ent_re_p, ent_im_p = pad_rows(ent_re, ne_pad), pad_rows(ent_im, ne_pad)
        rel_re_p, rel_im_p = pad_rows(rel_re, nr_pad), pad_rows(rel_im, nr_pad)

        idx_spec = pl.BlockSpec((tb, 1), lambda i: (i, 0))
        ent_spec = pl.BlockSpec((ne_pad, d), lambda i: (0, 0))   # VMEM-resident
        rel_spec = pl.BlockSpec((nr_pad, d), lambda i: (0, 0))   # VMEM-resident

        re, im = pl.pallas_call(
            _fused_kernel,
            out_shape=out_shapes,
            grid_spec=pltpu.PrefetchScalarGridSpec(
                num_scalar_prefetch=0,
                grid=grid,
                in_specs=[idx_spec, idx_spec, idx_spec,
                          ent_spec, ent_spec, rel_spec, rel_spec],
                out_specs=(out_spec, out_spec)),
            compiler_params=cparams,
        )(heads.reshape(-1, 1), tails.reshape(-1, 1), relations.reshape(-1, 1),
          ent_re_p, ent_im_p, rel_re_p, rel_im_p)
    else:
        # Fallback for large tables: pre-gather rows (already split re/im) in
        # the wrapper and stream large contiguous blocks through the kernel.
        hr = jnp.take(ent_re, heads, axis=0)
        hi = jnp.take(ent_im, heads, axis=0)
        tr = jnp.take(ent_re, tails, axis=0)
        ti = jnp.take(ent_im, tails, axis=0)
        rr = jnp.take(rel_re, relations, axis=0)
        ri = jnp.take(rel_im, relations, axis=0)

        row_spec = pl.BlockSpec((tb, d), lambda i: (i, 0))
        re, im = pl.pallas_call(
            _streaming_kernel,
            out_shape=out_shapes,
            grid_spec=pltpu.PrefetchScalarGridSpec(
                num_scalar_prefetch=0,
                grid=grid,
                in_specs=[row_spec] * 6,
                out_specs=(out_spec, out_spec)),
            compiler_params=cparams,
        )(hr, hi, tr, ti, rr, ri)

    return lax.complex(re[:B, 0], im[:B, 0])


# ---------------------------------------------------------------------------
# Reference + test
# ---------------------------------------------------------------------------

def _reference(entity_table, relation_table, heads, tails, relations):
    d = entity_table.shape[1] // 2
    h = entity_table[heads]
    t = entity_table[tails]
    r = relation_table[relations]
    ch = h[:, :d] + 1j * h[:, d:]
    ct = t[:, :d] + 1j * t[:, d:]
    cr = r[:, :d] + 1j * r[:, d:]
    return (ch * jnp.conj(cr) * ct).sum(axis=1)


if __name__ == "__main__":
    num_entities = 32
    num_relations = 8
    embedding_dim = 64          # D; table width is 2*D = 128 (real | imag)
    batch = 8

    key = jax.random.PRNGKey(0)
    k_ent, k_rel, k_h, k_t, k_r = jax.random.split(key, 5)

    # deterministic init matching normal_(0, 1/sqrt(num_*))
    entity_table = (jax.random.normal(k_ent, (num_entities, 2 * embedding_dim),
                                      dtype=jnp.float32)
                    * (1.0 / math.sqrt(num_entities)))
    relation_table = (jax.random.normal(k_rel, (num_relations, 2 * embedding_dim),
                                        dtype=jnp.float32)
                      * (1.0 / math.sqrt(num_relations)))

    heads = jax.random.randint(k_h, (batch,), 0, num_entities, dtype=jnp.int32)
    tails = jax.random.randint(k_t, (batch,), 0, num_entities, dtype=jnp.int32)
    relations = jax.random.randint(k_r, (batch,), 0, num_relations,
                                   dtype=jnp.int32)

    ref = _reference(entity_table, relation_table, heads, tails, relations)

    # Main path: fused in-kernel gather from VMEM-resident tables.
    scores = kg_complex_scores(entity_table, relation_table,
                               heads, tails, relations)
    scores = jax.block_until_ready(scores)
    assert scores.shape == (batch,) and scores.dtype == jnp.complex64
    assert jnp.allclose(scores, ref, atol=1e-5, rtol=1e-5)

    # Fallback path (large-table regime), forced for coverage.
    scores_s = kg_complex_scores(entity_table, relation_table,
                                 heads, tails, relations, force_streaming=True)
    scores_s = jax.block_until_ready(scores_s)
    assert jnp.allclose(scores_s, ref, atol=1e-5, rtol=1e-5)

    print("KERNEL_OK")
</pallas_src>

<mosaic_0001>
module attributes {stable_mosaic.version = 11 : i64} {
  func.func @_fused_kernel(%arg0: i32, %arg1: memref<128x1xi32, #tpu.memory_space<vmem>>, %arg2: memref<128x1xi32, #tpu.memory_space<vmem>>, %arg3: memref<128x1xi32, #tpu.memory_space<vmem>>, %arg4: memref<128x64xf32, #tpu.memory_space<vmem>>, %arg5: memref<128x64xf32, #tpu.memory_space<vmem>>, %arg6: memref<128x64xf32, #tpu.memory_space<vmem>>, %arg7: memref<128x64xf32, #tpu.memory_space<vmem>>, %arg8: memref<128x1xf32, #tpu.memory_space<vmem>>, %arg9: memref<128x1xf32, #tpu.memory_space<vmem>>) attributes {dimension_semantics = [#tpu.dimension_semantics<parallel>], iteration_bounds = array<i64: 1>, scalar_prefetch = 0 : i64, scratch_operands = 0 : i64, tpu.core_type = #tpu.core_type<tc>, window_params = [{transform_indices = @transform_0, window_bounds = array<i64: 128, 1>}, {transform_indices = @transform_1, window_bounds = array<i64: 128, 1>}, {transform_indices = @transform_2, window_bounds = array<i64: 128, 1>}, {pipeline_mode = #tpu.pipeline_mode<synchronous>, transform_indices = @transform_3, window_bounds = array<i64: 128, 64>}, {pipeline_mode = #tpu.pipeline_mode<synchronous>, transform_indices = @transform_4, window_bounds = array<i64: 128, 64>}, {pipeline_mode = #tpu.pipeline_mode<synchronous>, transform_indices = @transform_5, window_bounds = array<i64: 128, 64>}, {pipeline_mode = #tpu.pipeline_mode<synchronous>, transform_indices = @transform_6, window_bounds = array<i64: 128, 64>}, {transform_indices = @transform_7, window_bounds = array<i64: 128, 1>}, {transform_indices = @transform_8, window_bounds = array<i64: 128, 1>}]} {
    %c0 = arith.constant 0 : index
    %c0_0 = arith.constant 0 : index
    %0 = vector.load %arg1[%c0, %c0_0] : memref<128x1xi32, #tpu.memory_space<vmem>>, vector<128x1xi32>
    %1 = tpu.iota {dimensions = array<i32: 1>} : vector<128x128xi32>
    %2 = vector.broadcast %0 : vector<128x1xi32> to vector<128x128xi32>
    %3 = arith.cmpi eq, %2, %1 : vector<128x128xi32>
    %4 = arith.extui %3 : vector<128x128xi1> to vector<128x128xi32>
    %5 = arith.sitofp %4 : vector<128x128xi32> to vector<128x128xf32>
    %c0_1 = arith.constant 0 : index
    %c0_2 = arith.constant 0 : index
    %6 = vector.load %arg4[%c0_1, %c0_2] : memref<128x64xf32, #tpu.memory_space<vmem>>, vector<128x64xf32>
    %cst = arith.constant dense<0.000000e+00> : vector<128x64xf32>
    %7 = tpu.matmul %5, %6, %cst {dimension_numbers = #tpu.dot_dimension_numbers<[1], [0], [0], [1], [0, 0, 1, 1], [], []>} : vector<128x128xf32>, vector<128x64xf32>, vector<128x64xf32> -> vector<128x64xf32>
    %c0_3 = arith.constant 0 : index
    %c0_4 = arith.constant 0 : index
    %8 = vector.load %arg5[%c0_3, %c0_4] : memref<128x64xf32, #tpu.memory_space<vmem>>, vector<128x64xf32>
    %cst_5 = arith.constant dense<0.000000e+00> : vector<128x64xf32>
    %9 = tpu.matmul %5, %8, %cst_5 {dimension_numbers = #tpu.dot_dimension_numbers<[1], [0], [0], [1], [0, 0, 1, 1], [], []>} : vector<128x128xf32>, vector<128x64xf32>, vector<128x64xf32> -> vector<128x64xf32>
    %c0_6 = arith.constant 0 : index
    %c0_7 = arith.constant 0 : index
    %10 = vector.load %arg2[%c0_6, %c0_7] : memref<128x1xi32, #tpu.memory_space<vmem>>, vector<128x1xi32>
    %11 = tpu.iota {dimensions = array<i32: 1>} : vector<128x128xi32>
    %12 = vector.broadcast %10 : vector<128x1xi32> to vector<128x128xi32>
    %13 = arith.cmpi eq, %12, %11 : vector<128x128xi32>
    %14 = arith.extui %13 : vector<128x128xi1> to vector<128x128xi32>
    %15 = arith.sitofp %14 : vector<128x128xi32> to vector<128x128xf32>
    %c0_8 = arith.constant 0 : index
    %c0_9 = arith.constant 0 : index
    %16 = vector.load %arg4[%c0_8, %c0_9] : memref<128x64xf32, #tpu.memory_space<vmem>>, vector<128x64xf32>
    %cst_10 = arith.constant dense<0.000000e+00> : vector<128x64xf32>
    %17 = tpu.matmul %15, %16, %cst_10 {dimension_numbers = #tpu.dot_dimension_numbers<[1], [0], [0], [1], [0, 0, 1, 1], [], []>} : vector<128x128xf32>, vector<128x64xf32>, vector<128x64xf32> -> vector<128x64xf32>
    %c0_11 = arith.constant 0 : index
    %c0_12 = arith.constant 0 : index
    %18 = vector.load %arg5[%c0_11, %c0_12] : memref<128x64xf32, #tpu.memory_space<vmem>>, vector<128x64xf32>
    %cst_13 = arith.constant dense<0.000000e+00> : vector<128x64xf32>
    %19 = tpu.matmul %15, %18, %cst_13 {dimension_numbers = #tpu.dot_dimension_numbers<[1], [0], [0], [1], [0, 0, 1, 1], [], []>} : vector<128x128xf32>, vector<128x64xf32>, vector<128x64xf32> -> vector<128x64xf32>
    %c0_14 = arith.constant 0 : index
    %c0_15 = arith.constant 0 : index
    %20 = vector.load %arg3[%c0_14, %c0_15] : memref<128x1xi32, #tpu.memory_space<vmem>>, vector<128x1xi32>
    %21 = tpu.iota {dimensions = array<i32: 1>} : vector<128x128xi32>
    %22 = vector.broadcast %20 : vector<128x1xi32> to vector<128x128xi32>
    %23 = arith.cmpi eq, %22, %21 : vector<128x128xi32>
    %24 = arith.extui %23 : vector<128x128xi1> to vector<128x128xi32>
    %25 = arith.sitofp %24 : vector<128x128xi32> to vector<128x128xf32>
    %c0_16 = arith.constant 0 : index
    %c0_17 = arith.constant 0 : index
    %26 = vector.load %arg6[%c0_16, %c0_17] : memref<128x64xf32, #tpu.memory_space<vmem>>, vector<128x64xf32>
    %cst_18 = arith.constant dense<0.000000e+00> : vector<128x64xf32>
    %27 = tpu.matmul %25, %26, %cst_18 {dimension_numbers = #tpu.dot_dimension_numbers<[1], [0], [0], [1], [0, 0, 1, 1], [], []>} : vector<128x128xf32>, vector<128x64xf32>, vector<128x64xf32> -> vector<128x64xf32>
    %c0_19 = arith.constant 0 : index
    %c0_20 = arith.constant 0 : index
    %28 = vector.load %arg7[%c0_19, %c0_20] : memref<128x64xf32, #tpu.memory_space<vmem>>, vector<128x64xf32>
    %cst_21 = arith.constant dense<0.000000e+00> : vector<128x64xf32>
    %29 = tpu.matmul %25, %28, %cst_21 {dimension_numbers = #tpu.dot_dimension_numbers<[1], [0], [0], [1], [0, 0, 1, 1], [], []>} : vector<128x128xf32>, vector<128x64xf32>, vector<128x64xf32> -> vector<128x64xf32>
    %30 = arith.mulf %7, %27 : vector<128x64xf32>
    %31 = arith.mulf %9, %29 : vector<128x64xf32>
    %32 = arith.addf %30, %31 : vector<128x64xf32>
    %33 = arith.mulf %9, %27 : vector<128x64xf32>
    %34 = arith.mulf %7, %29 : vector<128x64xf32>
    %35 = arith.subf %33, %34 : vector<128x64xf32>
    %36 = arith.mulf %32, %17 : vector<128x64xf32>
    %37 = arith.mulf %35, %19 : vector<128x64xf32>
    %38 = arith.subf %36, %37 : vector<128x64xf32>
    %cst_22 = arith.constant dense<0.000000e+00> : vector<128xf32>
    %39 = vector.multi_reduction <add>, %38, %cst_22 [1] : vector<128x64xf32> to vector<128xf32>
    %40 = vector.shape_cast %39 : vector<128xf32> to vector<128x1xf32>
    %41 = arith.mulf %32, %19 : vector<128x64xf32>
    %42 = arith.mulf %35, %17 : vector<128x64xf32>
    %43 = arith.addf %41, %42 : vector<128x64xf32>
    %cst_23 = arith.constant dense<0.000000e+00> : vector<128xf32>
    %44 = vector.multi_reduction <add>, %43, %cst_23 [1] : vector<128x64xf32> to vector<128xf32>
    %45 = vector.shape_cast %44 : vector<128xf32> to vector<128x1xf32>
    %c0_24 = arith.constant 0 : index
    %c0_25 = arith.constant 0 : index
    %46 = vector.load %arg8[%c0_24, %c0_25] : memref<128x1xf32, #tpu.memory_space<vmem>>, vector<128x1xf32>
    tpu.vector_store %arg8[%c0_24, %c0_25], %40 {strides = array<i32>} : memref<128x1xf32, #tpu.memory_space<vmem>>, vector<128x1xf32>,
    %c0_26 = arith.constant 0 : index
    %c0_27 = arith.constant 0 : index
    %47 = vector.load %arg9[%c0_26, %c0_27] : memref<128x1xf32, #tpu.memory_space<vmem>>, vector<128x1xf32>
    tpu.vector_store %arg9[%c0_26, %c0_27], %45 {strides = array<i32>} : memref<128x1xf32, #tpu.memory_space<vmem>>, vector<128x1xf32>,
    return
  }
  func.func @transform_0(%arg0: i32) -> (i32, i32) {
    %c0_i32 = arith.constant 0 : i32
    %c0_i32_0 = arith.constant 0 : i32
    return %arg0, %c0_i32 : i32, i32
  }
  func.func @transform_1(%arg0: i32) -> (i32, i32) {
    %c0_i32 = arith.constant 0 : i32
    %c0_i32_0 = arith.constant 0 : i32
    return %arg0, %c0_i32 : i32, i32
  }
  func.func @transform_2(%arg0: i32) -> (i32, i32) {
    %c0_i32 = arith.constant 0 : i32
    %c0_i32_0 = arith.constant 0 : i32
    return %arg0, %c0_i32 : i32, i32
  }
  func.func @transform_3(%arg0: i32) -> (i32, i32) {
    %c0_i32 = arith.constant 0 : i32
    %c0_i32_0 = arith.constant 0 : i32
    %c0_i32_1 = arith.constant 0 : i32
    return %c0_i32, %c0_i32_0 : i32, i32
  }
  func.func @transform_4(%arg0: i32) -> (i32, i32) {
    %c0_i32 = arith.constant 0 : i32
    %c0_i32_0 = arith.constant 0 : i32
    %c0_i32_1 = arith.constant 0 : i32
    return %c0_i32, %c0_i32_0 : i32, i32
  }
  func.func @transform_5(%arg0: i32) -> (i32, i32) {
    %c0_i32 = arith.constant 0 : i32
    %c0_i32_0 = arith.constant 0 : i32
    %c0_i32_1 = arith.constant 0 : i32
    return %c0_i32, %c0_i32_0 : i32, i32
  }
  func.func @transform_6(%arg0: i32) -> (i32, i32) {
    %c0_i32 = arith.constant 0 : i32
    %c0_i32_0 = arith.constant 0 : i32
    %c0_i32_1 = arith.constant 0 : i32
    return %c0_i32, %c0_i32_0 : i32, i32
  }
  func.func @transform_7(%arg0: i32) -> (i32, i32) {
    %c0_i32 = arith.constant 0 : i32
    %c0_i32_0 = arith.constant 0 : i32
    return %arg0, %c0_i32 : i32, i32
  }
  func.func @transform_8(%arg0: i32) -> (i32, i32) {
    %c0_i32 = arith.constant 0 : i32
    %c0_i32_0 = arith.constant 0 : i32
    return %arg0, %c0_i32 : i32, i32
  }
}

</mosaic_0001>

<bundles_post_ra>
// kernel: tpu_custom_call.1
= control target key start
LH: loop header
LB: loop body
LE: loop exit
PB: predicated region body
PF: predicated region fallthrough
CT: control target
= control target key end

     0   :  { %v2498_v0 = vmov 0   ;;  %s3651_s0 = inlined_call_operand.vmem [shape: s32[128,1], index: 0, kind: input, shape index: {}]   ;;  %s3652_s3 = inlined_call_operand.vmem [shape: f32[128,64], index: 3, kind: input, shape index: {}]   ;;  %s3653_s4 = inlined_call_operand.vmem [shape: f32[128,64], index: 4, kind: input, shape index: {}]   ;;  %s3654_s1 = inlined_call_operand.vmem [shape: s32[128,1], index: 1, kind: input, shape index: {}]   ;;  %s3655_s2 = inlined_call_operand.vmem [shape: s32[128,1], index: 2, kind: input, shape index: {}]   ;;  %s3656_s5 = inlined_call_operand.vmem [shape: f32[128,64], index: 5, kind: input, shape index: {}]   ;;  %s3657_s6 = inlined_call_operand.vmem [shape: f32[128,64], index: 6, kind: input, shape index: {}]   ;;  %s3658_s7 = inlined_call_operand.vmem [shape: f32[128,1], index: 7, kind: output, shape index: {0}]   ;;  %s3659_s8 = inlined_call_operand.vmem [shape: f32[128,1], index: 8, kind: output, shape index: {1}]  }
   0x1   :  { %2497 = vset.pattern.permute.xlu1 %v2498_v0  ;;  %2496 = vset.pattern.permute.xlu0 %v2498_v0  ;;  %v30_v1 = vld [vmem:[%s3651_s0 + $0x10] sm:$0xff]  ;;  %v28_v2 = vld [vmem:[%s3651_s0] sm:$0xff]  ;;  %v31_v3 = vld [vmem:[%s3651_s0 + $0x18] sm:$0xff] }
   0x2   :  { %53 = vperm.xlu1 %2497, %v30_v1   ;;  %47 = vperm.xlu0 %2496, %v28_v2   ;;  %v29_v4 = vld [vmem:[%s3651_s0 + $0x8] sm:$0xff]  ;;  %v32_v6 = vld [vmem:[%s3651_s0 + $0x20] sm:$0xff]  ;;  %v35_v7 = vld [vmem:[%s3651_s0 + $0x38] sm:$0xff] }
   0x3   :  { %v33_v5 = vld [vmem:[%s3651_s0 + $0x28] sm:$0xff]  ;;  %v34_v8 = vld [vmem:[%s3651_s0 + $0x30] sm:$0xff]  ;;  %v36_v10 = vld [vmem:[%s3651_s0 + $0x40] sm:$0xff] }
   0x4   :  { %v37_v9 = vld [vmem:[%s3651_s0 + $0x48] sm:$0xff]  ;;  %v39_v11 = vld [vmem:[%s3651_s0 + $0x58] sm:$0xff]  ;;  %v142_v12 = vld [vmem:[%s3652_s3] sm:$0xff] }
   0x5   :  { %v143_v13 = vld [vmem:[%s3652_s3 + $0x8] sm:$0xff]  ;;  %v303_v14 = vld [vmem:[%s3653_s4] sm:$0xff]  ;;  %v144_v17 = vld [vmem:[%s3652_s3 + $0x10] sm:$0xff] }
   0x6   :  { %56 = vperm.xlu1 %2497, %v31_v3   ;;  %50 = vperm.xlu0 %2496, %v29_v4   ;;  %v2587_v15 = vpack.c.bf16 %v143_v13, %v142_v12  ;;  %v304_v16 = vld [vmem:[%s3653_s4 + $0x8] sm:$0xff]  ;;  %v145_v18 = vld [vmem:[%s3652_s3 + $0x18] sm:$0xff]  ;;  %v38_v19 = vld [vmem:[%s3651_s0 + $0x50] sm:$0xff] }
   0x7   :  { %v2601_v20 = vpack.c.bf16 %v304_v16, %v303_v14  ;;  %v2603_v21 = vpack.c.bf16 %v145_v18, %v144_v17  ;;  %v305_v22 = vld [vmem:[%s3653_s4 + $0x10] sm:$0xff]  ;;  %v306_v23 = vld [vmem:[%s3653_s4 + $0x18] sm:$0xff]  ;;  %v146_v25 = vld [vmem:[%s3652_s3 + $0x20] sm:$0xff] }
   0x8   :  { %2303 = vmatprep.subr.bf16.mxu0 %v2587_v15  ;;  %v2612_v24 = vpack.c.bf16 %v306_v23, %v305_v22  ;;  %v147_v26 = vld [vmem:[%s3652_s3 + $0x28] sm:$0xff]  ;;  %v307_v27 = vld [vmem:[%s3653_s4 + $0x20] sm:$0xff]  ;;  %v148_v33 = vld [vmem:[%s3652_s3 + $0x30] sm:$0xff] }
   0x9   :  { %2335 = vmatprep.subr.bf16.mxu1 %v2601_v20  ;;  %2305 = vmatpush3.bf16.msra.mxu0 %v2587_v15  ;;  %v308_v28 = vld [vmem:[%s3653_s4 + $0x28] sm:$0xff]  ;;  %v40_v30 = vld [vmem:[%s3651_s0 + $0x60] sm:$0xff]  ;;  %v2636_v31 = vpack.c.bf16 %v147_v26, %v146_v25  ;;  %v149_v34 = vld [vmem:[%s3652_s3 + $0x38] sm:$0xff] }
   0xa   :  { %62 = vperm.xlu1 %2497, %v33_v5   ;;  %59 = vperm.xlu0 %2496, %v32_v6   ;;  %v41_v29 = vld [vmem:[%s3651_s0 + $0x68] sm:$0xff]  ;;  %v2639_v32 = vpack.c.bf16 %v308_v28, %v307_v27  ;;  %v309_v35 = vld [vmem:[%s3653_s4 + $0x30] sm:$0xff]  ;;  %v310_v36 = vld [vmem:[%s3653_s4 + $0x38] sm:$0xff]  ;;  %v2662_v39 = vpack.c.bf16 %v149_v34, %v148_v33 }
   0xb   :  { %2337 = vmatpush3.bf16.msra.mxu1 %v2601_v20  ;;  %2307 = vmatprep.subr.bf16.mxu0 %v2603_v21  ;;  %v43_v37 = vld [vmem:[%s3651_s0 + $0x78] sm:$0xff]  ;;  %v42_v38 = vld [vmem:[%s3651_s0 + $0x70] sm:$0xff]  ;;  %v2665_v40 = vpack.c.bf16 %v310_v36, %v309_v35  ;;  %v150_v41 = vld [vmem:[%s3652_s3 + $0x40] sm:$0xff] }
   0xc   :  { %2339 = vmatprep.subr.bf16.mxu1 %v2612_v24  ;;  %v151_v42 = vld [vmem:[%s3652_s3 + $0x48] sm:$0xff]  ;;  %v311_v43 = vld [vmem:[%s3653_s4 + $0x40] sm:$0xff]  ;;  %v152_v49 = vld [vmem:[%s3652_s3 + $0x50] sm:$0xff] }
   0xd   :  { %2309 = vmatpush3.bf16.msra.mxu0 %v2603_v21  ;;  %v312_v44 = vld [vmem:[%s3653_s4 + $0x48] sm:$0xff]  ;;  %v464_v46 = vld [vmem:[%s3654_s1] sm:$0xff]  ;;  %v2688_v47 = vpack.c.bf16 %v151_v42, %v150_v41  ;;  %v153_v50 = vld [vmem:[%s3652_s3 + $0x58] sm:$0xff]  ;;  %v44_v41 = vlaneseq }
   0xe   :  { %68 = vperm.xlu1 %2497, %v35_v7   ;;  %65 = vperm.xlu0 %2496, %v34_v8   ;;  %v465_v45 = vld [vmem:[%s3654_s1 + $0x8] sm:$0xff]  ;;  %v2691_v48 = vpack.c.bf16 %v312_v44, %v311_v43  ;;  %v313_v51 = vld [vmem:[%s3653_s4 + $0x50] sm:$0xff]  ;;  %v314_v52 = vld [vmem:[%s3653_s4 + $0x58] sm:$0xff]  ;;  %v2714_v55 = vpack.c.bf16 %v153_v50, %v152_v49 }
   0xf   :  { %2341 = vmatpush3.bf16.msra.mxu1 %v2612_v24  ;;  %2311 = vmatprep.subr.bf16.mxu0 %v2636_v31  ;;  %v467_v53 = vld [vmem:[%s3654_s1 + $0x18] sm:$0xff]  ;;  %v466_v54 = vld [vmem:[%s3654_s1 + $0x10] sm:$0xff]  ;;  %v2717_v56 = vpack.c.bf16 %v314_v52, %v313_v51  ;;  %v154_v57 = vld [vmem:[%s3652_s3 + $0x60] sm:$0xff]  ;;  %v2851_v42 = vand.u32 127, %v44_v41 }
  0x10   :  { %2343 = vmatprep.subr.bf16.mxu1 %v2639_v32  ;;  %v155_v58 = vld [vmem:[%s3652_s3 + $0x68] sm:$0xff]  ;;  %v315_v59 = vld [vmem:[%s3653_s4 + $0x60] sm:$0xff]  ;;  %v156_v1 = vld [vmem:[%s3652_s3 + $0x70] sm:$0xff] }
  0x11   :  { %2313 = vmatpush3.bf16.msra.mxu0 %v2636_v31  ;;  %v316_v60 = vld [vmem:[%s3653_s4 + $0x68] sm:$0xff]  ;;  %v468_v62 = vld [vmem:[%s3654_s1 + $0x20] sm:$0xff]  ;;  %v2740_v63 = vpack.c.bf16 %v155_v58, %v154_v57  ;;  %v157_v2 = vld [vmem:[%s3652_s3 + $0x78] sm:$0xff] }
  0x12   :  { %74 = vperm.xlu1 %2497, %v37_v9   ;;  %71 = vperm.xlu0 %2496, %v36_v10   ;;  %v469_v61 = vld [vmem:[%s3654_s1 + $0x28] sm:$0xff]  ;;  %v2743_v0 = vpack.c.bf16 %v316_v60, %v315_v59  ;;  %v317_v3 = vld [vmem:[%s3653_s4 + $0x70] sm:$0xff]  ;;  %v318_v4 = vld [vmem:[%s3653_s4 + $0x78] sm:$0xff]  ;;  %v2766_v7 = vpack.c.bf16 %v157_v2, %v156_v1 }
  0x13   :  { %2345 = vmatpush3.bf16.msra.mxu1 %v2639_v32  ;;  %2315 = vmatprep.subr.bf16.mxu0 %v2662_v39  ;;  %v471_v5 = vld [vmem:[%s3654_s1 + $0x38] sm:$0xff]  ;;  %v470_v6 = vld [vmem:[%s3654_s1 + $0x30] sm:$0xff]  ;;  %v2769_v8 = vpack.c.bf16 %v318_v4, %v317_v3  ;;  %v473_v9 = vld [vmem:[%s3654_s1 + $0x48] sm:$0xff] }
  0x14   :  { %2347 = vmatprep.subr.bf16.mxu1 %v2665_v40  ;;  %v472_v10 = vld [vmem:[%s3654_s1 + $0x40] sm:$0xff]  ;;  %v474_v12 = vld [vmem:[%s3654_s1 + $0x50] sm:$0xff]  ;;  %v477_v13 = vld [vmem:[%s3654_s1 + $0x68] sm:$0xff] }
  0x15   :  { %2317 = vmatpush3.bf16.msra.mxu0 %v2662_v39  ;;  %v476_v14 = vld [vmem:[%s3654_s1 + $0x60] sm:$0xff]  ;;  %v479_v16 = vld [vmem:[%s3654_s1 + $0x78] sm:$0xff]  ;;  %v478_v17 = vld [vmem:[%s3654_s1 + $0x70] sm:$0xff] }
  0x16   :  { %80 = vperm.xlu1 %2497, %v39_v11   ;;  %77 = vperm.xlu0 %2496, %v38_v19   ;;  %v475_v11 = vld [vmem:[%s3654_s1 + $0x58] sm:$0xff]  ;;  %v867_v18 = vld [vmem:[%s3655_s2 + $0x8] sm:$0xff]  ;;  %v866_v19 = vld [vmem:[%s3655_s2] sm:$0xff] }
  0x17   :  { %2349 = vmatpush3.bf16.msra.mxu1 %v2665_v40  ;;  %2319 = vmatprep.subr.bf16.mxu0 %v2688_v47  ;;  %v869_v22 = vld [vmem:[%s3655_s2 + $0x18] sm:$0xff]  ;;  %v868_v23 = vld [vmem:[%s3655_s2 + $0x10] sm:$0xff]  ;;  %v871_v25 = vld [vmem:[%s3655_s2 + $0x28] sm:$0xff] }
  0x18   :  { %2351 = vmatprep.subr.bf16.mxu1 %v2691_v48  ;;  %v870_v26 = vld [vmem:[%s3655_s2 + $0x20] sm:$0xff]  ;;  %v873_v27 = vld [vmem:[%s3655_s2 + $0x38] sm:$0xff]  ;;  %v872_v28 = vld [vmem:[%s3655_s2 + $0x30] sm:$0xff] }
  0x19   :  { %2321 = vmatpush3.bf16.msra.mxu0 %v2688_v47  ;;  %v877_v33 = vld [vmem:[%s3655_s2 + $0x58] sm:$0xff]  ;;  %v876_v34 = vld [vmem:[%s3655_s2 + $0x50] sm:$0xff]  ;;  %v879_v35 = vld [vmem:[%s3655_s2 + $0x68] sm:$0xff] }
  0x1a   :  { %86 = vperm.xlu1 %2497, %v41_v29   ;;  %83 = vperm.xlu0 %2496, %v40_v30   ;;  %v875_v29 = vld [vmem:[%s3655_s2 + $0x48] sm:$0xff]  ;;  %v874_v30 = vld [vmem:[%s3655_s2 + $0x40] sm:$0xff]  ;;  %v980_v60 = vld [vmem:[%s3656_s5 + $0x10] sm:$0xff] }
  0x1b   :  { %2353 = vmatpush3.bf16.msra.mxu1 %v2691_v48  ;;  %2323 = vmatprep.subr.bf16.mxu0 %v2714_v55  ;;  %v878_v36 = vld [vmem:[%s3655_s2 + $0x60] sm:$0xff] }
  0x1c   :  { %2355 = vmatprep.subr.bf16.mxu1 %v2717_v56  ;;  %v978_v52 = vld [vmem:[%s3656_s5] sm:$0xff] }
  0x1d   :  { %2325 = vmatpush3.bf16.msra.mxu0 %v2714_v55  ;;  %v982_v4 = vld [vmem:[%s3656_s5 + $0x20] sm:$0xff] }
  0x1e   :  { %92 = vperm.xlu1 %2497, %v43_v37   ;;  %89 = vperm.xlu0 %2496, %v42_v38   ;;  %v881_v37 = vld [vmem:[%s3655_s2 + $0x78] sm:$0xff]  ;;  %v880_v38 = vld [vmem:[%s3655_s2 + $0x70] sm:$0xff] }
  0x1f   :  { %2357 = vmatpush3.bf16.msra.mxu1 %v2717_v56  ;;  %2327 = vmatprep.subr.bf16.mxu0 %v2740_v63 }
  0x20   :  { %2359 = vmatprep.subr.bf16.mxu1 %v2743_v0 }
  0x21   :  { %2329 = vmatpush3.bf16.msra.mxu0 %v2740_v63 }
  0x22   :  { %484 = vperm.xlu1 %2497, %v465_v45   ;;  %481 = vperm.xlu0 %2496, %v464_v46   ;;  %v2499_v45 = vmov 1.0  }
  0x23   :  { %2361 = vmatpush3.bf16.msra.mxu1 %v2743_v0  ;;  %2331 = vmatprep.subr.bf16.mxu0 %v2766_v7 }
  0x24   :  { %2363 = vmatprep.subr.bf16.mxu1 %v2769_v8 }
  0x25   :  { %2333 = vmatpush3.bf16.msra.mxu0 %v2766_v7 }
  0x26   :  { %490 = vperm.xlu1 %2497, %v467_v53   ;;  %487 = vperm.xlu0 %2496, %v466_v54   ;;  %v979_v53 = vld [vmem:[%s3656_s5 + $0x8] sm:$0xff]  ;;  %v1139_v54 = vld [vmem:[%s3657_s6] sm:$0xff] }
  0x27   :  { %2365 = vmatpush3.bf16.msra.mxu1 %v2769_v8  ;;  %2367 = vmatprep.subr.bf16.mxu0 %v2587_v15  ;;  %v2430_v58 = vpack.c.bf16 %v979_v53, %v978_v52 }
  0x28   :  { %2399 = vmatprep.subr.bf16.mxu1 %v2601_v20 }
  0x2a   :  { %496 = vperm.xlu1 %2497, %v469_v61   ;;  %493 = vperm.xlu0 %2496, %v468_v62   ;;  %v981_v61 = vld [vmem:[%s3656_s5 + $0x18] sm:$0xff]  ;;  %v1141_v62 = vld [vmem:[%s3657_s6 + $0x10] sm:$0xff] }
  0x2b   :  { %v2434_v2 = vpack.c.bf16 %v981_v61, %v980_v60 }
  0x2e   :  { %502 = vperm.xlu1 %2497, %v471_v5   ;;  %499 = vperm.xlu0 %2496, %v470_v6   ;;  %v983_v5 = vld [vmem:[%s3656_s5 + $0x28] sm:$0xff]  ;;  %v1143_v6 = vld [vmem:[%s3657_s6 + $0x20] sm:$0xff] }
  0x32   :  { %508 = vperm.xlu1 %2497, %v473_v9   ;;  %505 = vperm.xlu0 %2496, %v472_v10   ;;  %v2438_v10 = vpack.c.bf16 %v983_v5, %v982_v4 }
  0x36   :  { %514 = vperm.xlu1 %2497, %v475_v11   ;;  %511 = vperm.xlu0 %2496, %v474_v12   ;;  %v984_v12 = vld [vmem:[%s3656_s5 + $0x30] sm:$0xff] }
  0x3a   :  { %520 = vperm.xlu1 %2497, %v477_v13   ;;  %517 = vperm.xlu0 %2496, %v476_v14   ;;  %v985_v13 = vld [vmem:[%s3656_s5 + $0x38] sm:$0xff]  ;;  %v1145_v14 = vld [vmem:[%s3657_s6 + $0x30] sm:$0xff] }
  0x3e   :  { %526 = vperm.xlu1 %2497, %v479_v16   ;;  %523 = vperm.xlu0 %2496, %v478_v17   ;;  %v1146_v16 = vld [vmem:[%s3657_s6 + $0x38] sm:$0xff] }
  0x42   :  { %886 = vperm.xlu1 %2497, %v867_v18   ;;  %883 = vperm.xlu0 %2496, %v866_v19   ;;  %v2442_v19 = vpack.c.bf16 %v985_v13, %v984_v12 }
  0x46   :  { %892 = vperm.xlu1 %2497, %v869_v22   ;;  %889 = vperm.xlu0 %2496, %v868_v23   ;;  %v2474_v22 = vpack.c.bf16 %v1146_v16, %v1145_v14  ;;  %v986_v23 = vld [vmem:[%s3656_s5 + $0x40] sm:$0xff] }
  0x4a   :  { %898 = vperm.xlu1 %2497, %v871_v25   ;;  %895 = vperm.xlu0 %2496, %v870_v26   ;;  %v987_v25 = vld [vmem:[%s3656_s5 + $0x48] sm:$0xff]  ;;  %v1147_v26 = vld [vmem:[%s3657_s6 + $0x40] sm:$0xff] }
  0x4e   :  { %904 = vperm.xlu1 %2497, %v873_v27   ;;  %901 = vperm.xlu0 %2496, %v872_v28   ;;  %v1148_v27 = vld [vmem:[%s3657_s6 + $0x48] sm:$0xff] }
  0x52   :  { %910 = vperm.xlu1 %2497, %v875_v29   ;;  %907 = vperm.xlu0 %2496, %v874_v30   ;;  %v2446_v30 = vpack.c.bf16 %v987_v25, %v986_v23 }
  0x56   :  { %916 = vperm.xlu1 %2497, %v877_v33   ;;  %913 = vperm.xlu0 %2496, %v876_v34   ;;  %v2478_v33 = vpack.c.bf16 %v1148_v27, %v1147_v26  ;;  %v988_v34 = vld [vmem:[%s3656_s5 + $0x50] sm:$0xff] }
  0x5a   :  { %922 = vperm.xlu1 %2497, %v879_v35   ;;  %919 = vperm.xlu0 %2496, %v878_v36   ;;  %v989_v35 = vld [vmem:[%s3656_s5 + $0x58] sm:$0xff]  ;;  %v1149_v36 = vld [vmem:[%s3657_s6 + $0x50] sm:$0xff] }
  0x5e   :  { %928 = vperm.xlu1 %2497, %v881_v37   ;;  %925 = vperm.xlu0 %2496, %v880_v38   ;;  %v1150_v37 = vld [vmem:[%s3657_s6 + $0x58] sm:$0xff] }
  0x81   :  { %v54_v43 = vpop.permute.xlu1 %53  ;;  %v48_v44 = vpop.permute.xlu0 %47 }
  0x82   :  { %vm94_vm0 = vcmp.eq.s32.totalorder %v48_v44, %v2851_v42  ;;  %vm96_vm1 = vcmp.eq.s32.totalorder %v54_v43, %v2851_v42  ;;  %v2450_v43 = vpack.c.bf16 %v989_v35, %v988_v34  ;;  %v2482_v44 = vpack.c.bf16 %v1150_v37, %v1149_v36 }
  0x83   :  { %1998 = vmatprep.mubr.msk.f32.mxu0 %vm94_vm0, %v2499_v45  ;;  %2054 = vmatprep.mubr.msk.f32.mxu1 %vm94_vm0, %v2499_v45 }
  0x85   :  { %v57_v46 = vpop.permute.xlu1 %56  ;;  %v51_v49 = vpop.permute.xlu0 %50 }
  0x86   :  { %vm95_vm2 = vcmp.eq.s32.totalorder %v51_v49, %v2851_v42  ;;  %vm97_vm3 = vcmp.eq.s32.totalorder %v57_v46, %v2851_v42  ;;  %v990_v46 = vld [vmem:[%s3656_s5 + $0x60] sm:$0xff]  ;;  %v991_v49 = vld [vmem:[%s3656_s5 + $0x68] sm:$0xff] }
  0x87   :  { %1999 = vmatmul.mubr.msk.f32.vlgmr.msra.gmra.mrb[0].mxu0 %vm95_vm2, %v2499_v45  ;;  %2055 = vmatmul.mubr.msk.f32.vlgmr.msra.gmra.mrb[0].mxu1 %vm95_vm2, %v2499_v45 }
  0x88   :  { %2369 = vmatpush3.bf16.msra.mxu0 %v2587_v15  ;;  %2401 = vmatpush3.bf16.msra.mxu1 %v2601_v20 }
  0x89   :  { %2001 = vmatprep.mubr.msk.f32.mxu0 %vm96_vm1, %v2499_v45  ;;  %2057 = vmatprep.mubr.msk.f32.mxu1 %vm96_vm1, %v2499_v45  ;;  %v63_v50 = vpop.permute.xlu1 %62  ;;  %v60_v51 = vpop.permute.xlu0 %59 }
  0x8a   :  { %vm98_vm4 = vcmp.eq.s32.totalorder %v60_v51, %v2851_v42  ;;  %2371 = vmatprep.subr.bf16.mxu0 %v2603_v21  ;;  %2403 = vmatprep.subr.bf16.mxu1 %v2612_v24  ;;  %vm99_vm5 = vcmp.eq.s32.totalorder %v63_v50, %v2851_v42  ;;  %v1151_v50 = vld [vmem:[%s3657_s6 + $0x60] sm:$0xff]  ;;  %v1152_v51 = vld [vmem:[%s3657_s6 + $0x68] sm:$0xff] }
  0x8b   :  { %2002 = vmatmul.mubr.msk.f32.gmra.mrb[2].mxu0 %vm97_vm3, %v2499_v45  ;;  %2058 = vmatmul.mubr.msk.f32.gmra.mrb[2].mxu1 %vm97_vm3, %v2499_v45 }
  0x8c   :  { %2373 = vmatpush3.bf16.msra.mxu0 %v2603_v21  ;;  %2405 = vmatpush3.bf16.msra.mxu1 %v2612_v24 }
  0x8d   :  { %2004 = vmatprep.mubr.msk.f32.mxu0 %vm98_vm4, %v2499_v45  ;;  %2060 = vmatprep.mubr.msk.f32.mxu1 %vm98_vm4, %v2499_v45  ;;  %v69_v15 = vpop.permute.xlu1 %68  ;;  %v66_v20 = vpop.permute.xlu0 %65 }
  0x8e   :  { %vm100_vm6 = vcmp.eq.s32.totalorder %v66_v20, %v2851_v42  ;;  %2375 = vmatprep.subr.bf16.mxu0 %v2636_v31  ;;  %2407 = vmatprep.subr.bf16.mxu1 %v2639_v32  ;;  %vm101_vm7 = vcmp.eq.s32.totalorder %v69_v15, %v2851_v42 }
  0x8f   :  { %2005 = vmatmul.mubr.msk.f32.gmra.mrb[4].mxu0 %vm99_vm5, %v2499_v45  ;;  %2061 = vmatmul.mubr.msk.f32.gmra.mrb[4].mxu1 %vm99_vm5, %v2499_v45 }
  0x90   :  { %2377 = vmatpush3.bf16.msra.mxu0 %v2636_v31  ;;  %2409 = vmatpush3.bf16.msra.mxu1 %v2639_v32 }
  0x91   :  { %2007 = vmatprep.mubr.msk.f32.mxu0 %vm100_vm6, %v2499_v45  ;;  %2063 = vmatprep.mubr.msk.f32.mxu1 %vm100_vm6, %v2499_v45  ;;  %v75_v21 = vpop.permute.xlu1 %74  ;;  %v72_v24 = vpop.permute.xlu0 %71 }
  0x92   :  { %vm102_vm8 = vcmp.eq.s32.totalorder %v72_v24, %v2851_v42  ;;  %2379 = vmatprep.subr.bf16.mxu0 %v2662_v39  ;;  %2411 = vmatprep.subr.bf16.mxu1 %v2665_v40  ;;  %vm103_vm9 = vcmp.eq.s32.totalorder %v75_v21, %v2851_v42  ;;  %v2454_v21 = vpack.c.bf16 %v991_v49, %v990_v46 }
  0x93   :  { %2008 = vmatmul.mubr.msk.f32.gmra.mrb[6].mxu0 %vm101_vm7, %v2499_v45  ;;  %2064 = vmatmul.mubr.msk.f32.gmra.mrb[6].mxu1 %vm101_vm7, %v2499_v45  ;;  %v2486_v24 = vpack.c.bf16 %v1152_v51, %v1151_v50 }
  0x94   :  { %2381 = vmatpush3.bf16.msra.mxu0 %v2662_v39  ;;  %2413 = vmatpush3.bf16.msra.mxu1 %v2665_v40 }
  0x95   :  { %2010 = vmatprep.mubr.msk.f32.mxu0 %vm102_vm8, %v2499_v45  ;;  %2066 = vmatprep.mubr.msk.f32.mxu1 %vm102_vm8, %v2499_v45  ;;  %v81_v31 = vpop.permute.xlu1 %80  ;;  %v78_v32 = vpop.permute.xlu0 %77 }
  0x96   :  { %vm104_vm10 = vcmp.eq.s32.totalorder %v78_v32, %v2851_v42  ;;  %2383 = vmatprep.subr.bf16.mxu0 %v2688_v47  ;;  %2415 = vmatprep.subr.bf16.mxu1 %v2691_v48  ;;  %vm105_vm11 = vcmp.eq.s32.totalorder %v81_v31, %v2851_v42  ;;  %v992_v31 = vld [vmem:[%s3656_s5 + $0x70] sm:$0xff]  ;;  %v993_v32 = vld [vmem:[%s3656_s5 + $0x78] sm:$0xff] }
  0x97   :  { %2011 = vmatmul.mubr.msk.f32.gmra.mrb[8].mxu0 %vm103_vm9, %v2499_v45  ;;  %2067 = vmatmul.mubr.msk.f32.gmra.mrb[8].mxu1 %vm103_vm9, %v2499_v45  ;;  %v2458_v52 = vpack.c.bf16 %v993_v32, %v992_v31 }
  0x98   :  { %2385 = vmatpush3.bf16.msra.mxu0 %v2688_v47  ;;  %2417 = vmatpush3.bf16.msra.mxu1 %v2691_v48 }
  0x99   :  { %2013 = vmatprep.mubr.msk.f32.mxu0 %vm104_vm10, %v2499_v45  ;;  %2069 = vmatprep.mubr.msk.f32.mxu1 %vm104_vm10, %v2499_v45  ;;  %v87_v39 = vpop.permute.xlu1 %86  ;;  %v84_v40 = vpop.permute.xlu0 %83 }
  0x9a   :  { %vm106_vm12 = vcmp.eq.s32.totalorder %v84_v40, %v2851_v42  ;;  %2387 = vmatprep.subr.bf16.mxu0 %v2714_v55  ;;  %2419 = vmatprep.subr.bf16.mxu1 %v2717_v56  ;;  %vm107_vm13 = vcmp.eq.s32.totalorder %v87_v39, %v2851_v42  ;;  %v1153_v39 = vld [vmem:[%s3657_s6 + $0x70] sm:$0xff]  ;;  %v1154_v40 = vld [vmem:[%s3657_s6 + $0x78] sm:$0xff] }
  0x9b   :  { %2014 = vmatmul.mubr.msk.f32.gmra.mrb[10].mxu0 %vm105_vm11, %v2499_v45  ;;  %2070 = vmatmul.mubr.msk.f32.gmra.mrb[10].mxu1 %vm105_vm11, %v2499_v45  ;;  %v2490_v53 = vpack.c.bf16 %v1154_v40, %v1153_v39 }
  0x9c   :  { %2389 = vmatpush3.bf16.msra.mxu0 %v2714_v55  ;;  %2421 = vmatpush3.bf16.msra.mxu1 %v2717_v56  ;;  %v1140_v55 = vld [vmem:[%s3657_s6 + $0x8] sm:$0xff] }
  0x9d   :  { %2016 = vmatprep.mubr.msk.f32.mxu0 %vm106_vm12, %v2499_v45  ;;  %2072 = vmatprep.mubr.msk.f32.mxu1 %vm106_vm12, %v2499_v45  ;;  %v93_v47 = vpop.permute.xlu1 %92  ;;  %v90_v48 = vpop.permute.xlu0 %89  ;;  %v2462_v59 = vpack.c.bf16 %v1140_v55, %v1139_v54 }
  0x9e   :  { %vm108_vm14 = vcmp.eq.s32.totalorder %v90_v48, %v2851_v42  ;;  %2391 = vmatprep.subr.bf16.mxu0 %v2740_v63  ;;  %2423 = vmatprep.subr.bf16.mxu1 %v2743_v0  ;;  %vm109_vm15 = vcmp.eq.s32.totalorder %v93_v47, %v2851_v42 }
  0x9f   :  { %2017 = vmatmul.mubr.msk.f32.gmra.mrb[12].mxu0 %vm107_vm13, %v2499_v45  ;;  %2073 = vmatmul.mubr.msk.f32.gmra.mrb[12].mxu1 %vm107_vm13, %v2499_v45 }
  0xa0   :  { %2393 = vmatpush3.bf16.msra.mxu0 %v2740_v63  ;;  %2425 = vmatpush3.bf16.msra.mxu1 %v2743_v0  ;;  %v1142_v63 = vld [vmem:[%s3657_s6 + $0x18] sm:$0xff] }
  0xa1   :  { %2019 = vmatprep.mubr.msk.f32.mxu0 %vm108_vm14, %v2499_v45  ;;  %2075 = vmatprep.mubr.msk.f32.mxu1 %vm108_vm14, %v2499_v45  ;;  %v485_v56 = vpop.permute.xlu1 %484  ;;  %v482_v57 = vpop.permute.xlu0 %481  ;;  %v2466_v3 = vpack.c.bf16 %v1142_v63, %v1141_v62 }
  0xa2   :  { %vm528_vm0 = vcmp.eq.s32.totalorder %v482_v57, %v2851_v42  ;;  %2395 = vmatprep.subr.bf16.mxu0 %v2766_v7  ;;  %2427 = vmatprep.subr.bf16.mxu1 %v2769_v8  ;;  %vm529_vm1 = vcmp.eq.s32.totalorder %v485_v56, %v2851_v42 }
  0xa3   :  { %2020 = vmatmul.mubr.msk.f32.gmra.mrb[14].mxu0 %vm109_vm15, %v2499_v45  ;;  %2076 = vmatmul.mubr.msk.f32.gmra.mrb[14].mxu1 %vm109_vm15, %v2499_v45 }
  0xa4   :  { %2397 = vmatpush3.bf16.msra.mxu0 %v2766_v7  ;;  %2429 = vmatpush3.bf16.msra.mxu1 %v2769_v8  ;;  %v1144_v7 = vld [vmem:[%s3657_s6 + $0x28] sm:$0xff] }
  0xa5   :  { %2110 = vmatprep.mubr.msk.f32.mxu0 %vm528_vm0, %v2499_v45  ;;  %2166 = vmatprep.mubr.msk.f32.mxu1 %vm528_vm0, %v2499_v45  ;;  %v491_v0 = vpop.permute.xlu1 %490  ;;  %v488_v1 = vpop.permute.xlu0 %487  ;;  %v2470_v11 = vpack.c.bf16 %v1144_v7, %v1143_v6 }
  0xa6   :  { %vm530_vm2 = vcmp.eq.s32.totalorder %v488_v1, %v2851_v42  ;;  %2431 = vmatprep.subr.bf16.mxu0 %v2430_v58  ;;  %2463 = vmatprep.subr.bf16.mxu1 %v2462_v59  ;;  %vm531_vm3 = vcmp.eq.s32.totalorder %v491_v0, %v2851_v42 }
  0xa7   :  { %2111 = vmatmul.mubr.msk.f32.vlgmr.msra.gmra.mrb[16].mxu0 %vm529_vm1, %v2499_v45  ;;  %2167 = vmatmul.mubr.msk.f32.vlgmr.msra.gmra.mrb[16].mxu1 %vm529_vm1, %v2499_v45 }
  0xa8   :  { %2433 = vmatpush3.bf16.msra.mxu0 %v2430_v58  ;;  %2465 = vmatpush3.bf16.msra.mxu1 %v2462_v59 }
  0xa9   :  { %2113 = vmatprep.mubr.msk.f32.mxu0 %vm530_vm2, %v2499_v45  ;;  %2169 = vmatprep.mubr.msk.f32.mxu1 %vm530_vm2, %v2499_v45  ;;  %v497_v8 = vpop.permute.xlu1 %496  ;;  %v494_v9 = vpop.permute.xlu0 %493 }
  0xaa   :  { %vm532_vm4 = vcmp.eq.s32.totalorder %v494_v9, %v2851_v42  ;;  %2435 = vmatprep.subr.bf16.mxu0 %v2434_v2  ;;  %2467 = vmatprep.subr.bf16.mxu1 %v2466_v3  ;;  %vm533_vm5 = vcmp.eq.s32.totalorder %v497_v8, %v2851_v42 }
  0xab   :  { %2114 = vmatmul.mubr.msk.f32.gmra.mrb[18].mxu0 %vm531_vm3, %v2499_v45  ;;  %2170 = vmatmul.mubr.msk.f32.gmra.mrb[18].mxu1 %vm531_vm3, %v2499_v45 }
  0xac   :  { %2437 = vmatpush3.bf16.msra.mxu0 %v2434_v2  ;;  %2469 = vmatpush3.bf16.msra.mxu1 %v2466_v3 }
  0xad   :  { %2116 = vmatprep.mubr.msk.f32.mxu0 %vm532_vm4, %v2499_v45  ;;  %2172 = vmatprep.mubr.msk.f32.mxu1 %vm532_vm4, %v2499_v45  ;;  %v503_v17 = vpop.permute.xlu1 %502  ;;  %v500_v18 = vpop.permute.xlu0 %499 }
  0xae   :  { %vm534_vm6 = vcmp.eq.s32.totalorder %v500_v18, %v2851_v42  ;;  %2439 = vmatprep.subr.bf16.mxu0 %v2438_v10  ;;  %2471 = vmatprep.subr.bf16.mxu1 %v2470_v11  ;;  %vm535_vm7 = vcmp.eq.s32.totalorder %v503_v17, %v2851_v42 }
  0xaf   :  { %2117 = vmatmul.mubr.msk.f32.gmra.mrb[20].mxu0 %vm533_vm5, %v2499_v45  ;;  %2173 = vmatmul.mubr.msk.f32.gmra.mrb[20].mxu1 %vm533_vm5, %v2499_v45 }
  0xb0   :  { %2441 = vmatpush3.bf16.msra.mxu0 %v2438_v10  ;;  %2473 = vmatpush3.bf16.msra.mxu1 %v2470_v11 }
  0xb1   :  { %2119 = vmatprep.mubr.msk.f32.mxu0 %vm534_vm6, %v2499_v45  ;;  %2175 = vmatprep.mubr.msk.f32.mxu1 %vm534_vm6, %v2499_v45  ;;  %v509_v28 = vpop.permute.xlu1 %508  ;;  %v506_v29 = vpop.permute.xlu0 %505 }
  0xb2   :  { %vm536_vm8 = vcmp.eq.s32.totalorder %v506_v29, %v2851_v42  ;;  %2443 = vmatprep.subr.bf16.mxu0 %v2442_v19  ;;  %2475 = vmatprep.subr.bf16.mxu1 %v2474_v22  ;;  %vm537_vm9 = vcmp.eq.s32.totalorder %v509_v28, %v2851_v42 }
  0xb3   :  { %2120 = vmatmul.mubr.msk.f32.gmra.mrb[22].mxu0 %vm535_vm7, %v2499_v45  ;;  %2176 = vmatmul.mubr.msk.f32.gmra.mrb[22].mxu1 %vm535_vm7, %v2499_v45 }
  0xb4   :  { %2445 = vmatpush3.bf16.msra.mxu0 %v2442_v19  ;;  %2477 = vmatpush3.bf16.msra.mxu1 %v2474_v22 }
  0xb5   :  { %2122 = vmatprep.mubr.msk.f32.mxu0 %vm536_vm8, %v2499_v45  ;;  %2178 = vmatprep.mubr.msk.f32.mxu1 %vm536_vm8, %v2499_v45  ;;  %v515_v38 = vpop.permute.xlu1 %514  ;;  %v512_v41 = vpop.permute.xlu0 %511 }
  0xb6   :  { %vm538_vm10 = vcmp.eq.s32.totalorder %v512_v41, %v2851_v42  ;;  %2447 = vmatprep.subr.bf16.mxu0 %v2446_v30  ;;  %2479 = vmatprep.subr.bf16.mxu1 %v2478_v33  ;;  %vm539_vm11 = vcmp.eq.s32.totalorder %v515_v38, %v2851_v42 }
  0xb7   :  { %2123 = vmatmul.mubr.msk.f32.gmra.mrb[24].mxu0 %vm537_vm9, %v2499_v45  ;;  %2179 = vmatmul.mubr.msk.f32.gmra.mrb[24].mxu1 %vm537_vm9, %v2499_v45 }
  0xb8   :  { %2449 = vmatpush3.bf16.msra.mxu0 %v2446_v30  ;;  %2481 = vmatpush3.bf16.msra.mxu1 %v2478_v33 }
  0xb9   :  { %2125 = vmatprep.mubr.msk.f32.mxu0 %vm538_vm10, %v2499_v45  ;;  %2181 = vmatprep.mubr.msk.f32.mxu1 %vm538_vm10, %v2499_v45  ;;  %v521_v15 = vpop.permute.xlu1 %520  ;;  %v518_v20 = vpop.permute.xlu0 %517 }
  0xba   :  { %vm540_vm12 = vcmp.eq.s32.totalorder %v518_v20, %v2851_v42  ;;  %2451 = vmatprep.subr.bf16.mxu0 %v2450_v43  ;;  %2483 = vmatprep.subr.bf16.mxu1 %v2482_v44  ;;  %vm541_vm13 = vcmp.eq.s32.totalorder %v521_v15, %v2851_v42 }
  0xbb   :  { %2126 = vmatmul.mubr.msk.f32.gmra.mrb[26].mxu0 %vm539_vm11, %v2499_v45  ;;  %2182 = vmatmul.mubr.msk.f32.gmra.mrb[26].mxu1 %vm539_vm11, %v2499_v45 }
  0xbc   :  { %2453 = vmatpush3.bf16.msra.mxu0 %v2450_v43  ;;  %2485 = vmatpush3.bf16.msra.mxu1 %v2482_v44 }
  0xbd   :  { %2128 = vmatprep.mubr.msk.f32.mxu0 %vm540_vm12, %v2499_v45  ;;  %2184 = vmatprep.mubr.msk.f32.mxu1 %vm540_vm12, %v2499_v45  ;;  %v527_v47 = vpop.permute.xlu1 %526  ;;  %v524_v48 = vpop.permute.xlu0 %523 }
  0xbe   :  { %vm542_vm14 = vcmp.eq.s32.totalorder %v524_v48, %v2851_v42  ;;  %2455 = vmatprep.subr.bf16.mxu0 %v2454_v21  ;;  %2487 = vmatprep.subr.bf16.mxu1 %v2486_v24  ;;  %vm543_vm15 = vcmp.eq.s32.totalorder %v527_v47, %v2851_v42 }
  0xbf   :  { %2129 = vmatmul.mubr.msk.f32.gmra.mrb[28].mxu0 %vm541_vm13, %v2499_v45  ;;  %2185 = vmatmul.mubr.msk.f32.gmra.mrb[28].mxu1 %vm541_vm13, %v2499_v45 }
  0xc0   :  { %2457 = vmatpush3.bf16.msra.mxu0 %v2454_v21  ;;  %2489 = vmatpush3.bf16.msra.mxu1 %v2486_v24 }
  0xc1   :  { %2131 = vmatprep.mubr.msk.f32.mxu0 %vm542_vm14, %v2499_v45  ;;  %2187 = vmatprep.mubr.msk.f32.mxu1 %vm542_vm14, %v2499_v45  ;;  %v887_v54 = vpop.permute.xlu1 %886  ;;  %v884_v55 = vpop.permute.xlu0 %883 }
  0xc2   :  { %vm930_vm0 = vcmp.eq.s32.totalorder %v884_v55, %v2851_v42  ;;  %2459 = vmatprep.subr.bf16.mxu0 %v2458_v52  ;;  %2491 = vmatprep.subr.bf16.mxu1 %v2490_v53  ;;  %vm931_vm1 = vcmp.eq.s32.totalorder %v887_v54, %v2851_v42 }
  0xc3   :  { %2132 = vmatmul.mubr.msk.f32.gmra.mrb[30].mxu0 %vm543_vm15, %v2499_v45  ;;  %2188 = vmatmul.mubr.msk.f32.gmra.mrb[30].mxu1 %vm543_vm15, %v2499_v45 }
  0xc4   :  { %2461 = vmatpush3.bf16.msra.mxu0 %v2458_v52  ;;  %2493 = vmatpush3.bf16.msra.mxu1 %v2490_v53 }
  0xc5   :  { %2222 = vmatprep.mubr.msk.f32.mxu0 %vm930_vm0, %v2499_v45  ;;  %2278 = vmatprep.mubr.msk.f32.mxu1 %vm930_vm0, %v2499_v45  ;;  %v893_v56 = vpop.permute.xlu1 %892  ;;  %v890_v57 = vpop.permute.xlu0 %889  ;;  %vm1444_vm0 = vcmask 523264  }
  0xc6   :  { %vm932_vm2 = vcmp.eq.s32.totalorder %v890_v57, %v2851_v42  ;;  %vm933_vm3 = vcmp.eq.s32.totalorder %v893_v56, %v2851_v42 }
  0xc7   :  { %2223 = vmatmul.mubr.msk.f32.vlgmr.msra.gmra.mrb[32].mxu0 %vm931_vm1, %v2499_v45  ;;  %2279 = vmatmul.mubr.msk.f32.vlgmr.msra.gmra.mrb[32].mxu1 %vm931_vm1, %v2499_v45  ;;  %vm1589_vm1 = vcmask 7168  }
  0xc8   :  { %2225 = vmatprep.mubr.msk.f32.mxu0 %vm932_vm2, %v2499_v45  ;;  %2281 = vmatprep.mubr.msk.f32.mxu1 %vm932_vm2, %v2499_v45 }
  0xc9   :  { %v899_v58 = vpop.permute.xlu1 %898  ;;  %v896_v59 = vpop.permute.xlu0 %895 }
  0xca   :  { %vm934_vm4 = vcmp.eq.s32.totalorder %v896_v59, %v2851_v42  ;;  %vm935_vm5 = vcmp.eq.s32.totalorder %v899_v58, %v2851_v42 }
  0xcb   :  { %2226 = vmatmul.mubr.msk.f32.gmra.mrb[34].mxu0 %vm933_vm3, %v2499_v45  ;;  %2282 = vmatmul.mubr.msk.f32.gmra.mrb[34].mxu1 %vm933_vm3, %v2499_v45 }
  0xcc   :  { %2228 = vmatprep.mubr.msk.f32.mxu0 %vm934_vm4, %v2499_v45  ;;  %2284 = vmatprep.mubr.msk.f32.mxu1 %vm934_vm4, %v2499_v45 }
  0xcd   :  { %v905_v60 = vpop.permute.xlu1 %904  ;;  %v902_v61 = vpop.permute.xlu0 %901 }
  0xce   :  { %vm936_vm6 = vcmp.eq.s32.totalorder %v902_v61, %v2851_v42  ;;  %vm937_vm7 = vcmp.eq.s32.totalorder %v905_v60, %v2851_v42 }
  0xcf   :  { %2229 = vmatmul.mubr.msk.f32.gmra.mrb[36].mxu0 %vm935_vm5, %v2499_v45  ;;  %2285 = vmatmul.mubr.msk.f32.gmra.mrb[36].mxu1 %vm935_vm5, %v2499_v45 }
  0xd0   :  { %2231 = vmatprep.mubr.msk.f32.mxu0 %vm936_vm6, %v2499_v45  ;;  %2287 = vmatprep.mubr.msk.f32.mxu1 %vm936_vm6, %v2499_v45 }
  0xd1   :  { %v911_v62 = vpop.permute.xlu1 %910  ;;  %v908_v63 = vpop.permute.xlu0 %907 }
  0xd2   :  { %vm938_vm8 = vcmp.eq.s32.totalorder %v908_v63, %v2851_v42  ;;  %vm939_vm9 = vcmp.eq.s32.totalorder %v911_v62, %v2851_v42 }
  0xd3   :  { %2232 = vmatmul.mubr.msk.f32.gmra.mrb[38].mxu0 %vm937_vm7, %v2499_v45  ;;  %2288 = vmatmul.mubr.msk.f32.gmra.mrb[38].mxu1 %vm937_vm7, %v2499_v45 }
  0xd4   :  { %2234 = vmatprep.mubr.msk.f32.mxu0 %vm938_vm8, %v2499_v45  ;;  %2290 = vmatprep.mubr.msk.f32.mxu1 %vm938_vm8, %v2499_v45 }
  0xd5   :  { %v917_v0 = vpop.permute.xlu1 %916  ;;  %v914_v1 = vpop.permute.xlu0 %913 }
  0xd6   :  { %vm940_vm10 = vcmp.eq.s32.totalorder %v914_v1, %v2851_v42  ;;  %vm941_vm11 = vcmp.eq.s32.totalorder %v917_v0, %v2851_v42 }
  0xd7   :  { %2235 = vmatmul.mubr.msk.f32.gmra.mrb[40].mxu0 %vm939_vm9, %v2499_v45  ;;  %2291 = vmatmul.mubr.msk.f32.gmra.mrb[40].mxu1 %vm939_vm9, %v2499_v45 }
  0xd8   :  { %2237 = vmatprep.mubr.msk.f32.mxu0 %vm940_vm10, %v2499_v45  ;;  %2293 = vmatprep.mubr.msk.f32.mxu1 %vm940_vm10, %v2499_v45 }
  0xd9   :  { %v923_v2 = vpop.permute.xlu1 %922  ;;  %v920_v3 = vpop.permute.xlu0 %919 }
  0xda   :  { %vm942_vm12 = vcmp.eq.s32.totalorder %v920_v3, %v2851_v42  ;;  %vm943_vm13 = vcmp.eq.s32.totalorder %v923_v2, %v2851_v42 }
  0xdb   :  { %2238 = vmatmul.mubr.msk.f32.gmra.mrb[42].mxu0 %vm941_vm11, %v2499_v45  ;;  %2294 = vmatmul.mubr.msk.f32.gmra.mrb[42].mxu1 %vm941_vm11, %v2499_v45 }
  0xdc   :  { %2240 = vmatprep.mubr.msk.f32.mxu0 %vm942_vm12, %v2499_v45  ;;  %2296 = vmatprep.mubr.msk.f32.mxu1 %vm942_vm12, %v2499_v45 }
  0xdd   :  { %v926_v4 = vpop.permute.xlu0 %925  ;;  %v929_v5 = vpop.permute.xlu1 %928 }
  0xde   :  { %vm944_vm14 = vcmp.eq.s32.totalorder %v926_v4, %v2851_v42  ;;  %vm945_vm15 = vcmp.eq.s32.totalorder %v929_v5, %v2851_v42 }
  0xdf   :  { %2241 = vmatmul.mubr.msk.f32.gmra.mrb[44].mxu0 %vm943_vm13, %v2499_v45  ;;  %2297 = vmatmul.mubr.msk.f32.gmra.mrb[44].mxu1 %vm943_vm13, %v2499_v45 }
  0xe0   :  { %2243 = vmatprep.mubr.msk.f32.mxu0 %vm944_vm14, %v2499_v45  ;;  %2299 = vmatprep.mubr.msk.f32.mxu1 %vm944_vm14, %v2499_v45 }
  0xe3   :  { %2244 = vmatmul.mubr.msk.f32.gmra.mrb[46].mxu0 %vm945_vm15, %v2499_v45  ;;  %2300 = vmatmul.mubr.msk.f32.gmra.mrb[46].mxu1 %vm945_vm15, %v2499_v45 }
 0x15a   :  { %v3123_v6 = vpop.f32.mrb[0].mxu0  ;;  %v3125_v7 = vpop.f32.mrb[0].mxu1 }
 0x15b   :  { %v3127_v8 = vpop.f32.mrb[1].mxu0  ;;  %v3129_v9 = vpop.f32.mrb[1].mxu1 }
 0x15e   :  { %v3131_v10 = vpop.f32.mrb[2].mxu0  ;;  %v3133_v11 = vpop.f32.mrb[2].mxu1 }
 0x15f   :  { %v3135_v12 = vpop.f32.mrb[3].mxu0  ;;  %v3137_v13 = vpop.f32.mrb[3].mxu1 }
 0x162   :  { %v3139_v42 = vpop.f32.mrb[4].mxu0  ;;  %v3141_v14 = vpop.f32.mrb[4].mxu1 }
 0x163   :  { %v3143_v45 = vpop.f32.mrb[5].mxu0  ;;  %v3145_v16 = vpop.f32.mrb[5].mxu1 }
 0x166   :  { %v3147_v17 = vpop.f32.mrb[6].mxu0  ;;  %v3149_v18 = vpop.f32.mrb[6].mxu1 }
 0x167   :  { %v3151_v19 = vpop.f32.mrb[7].mxu0  ;;  %v3153_v22 = vpop.f32.mrb[7].mxu1 }
 0x16a   :  { %v3155_v23 = vpop.f32.mrb[8].mxu0  ;;  %v3157_v25 = vpop.f32.mrb[8].mxu1 }
 0x16b   :  { %v3159_v26 = vpop.f32.mrb[9].mxu0  ;;  %v3161_v27 = vpop.f32.mrb[9].mxu1 }
 0x16e   :  { %v3163_v28 = vpop.f32.mrb[10].mxu0  ;;  %v3165_v29 = vpop.f32.mrb[10].mxu1 }
 0x16f   :  { %v3167_v30 = vpop.f32.mrb[11].mxu0  ;;  %v3169_v33 = vpop.f32.mrb[11].mxu1 }
 0x172   :  { %v3171_v34 = vpop.f32.mrb[12].mxu0  ;;  %v3173_v35 = vpop.f32.mrb[12].mxu1 }
 0x173   :  { %v3175_v36 = vpop.f32.mrb[13].mxu0  ;;  %v3177_v37 = vpop.f32.mrb[13].mxu1 }
 0x176   :  { %v3179_v38 = vpop.f32.mrb[14].mxu0  ;;  %v3181_v41 = vpop.f32.mrb[14].mxu1 }
 0x177   :  { %v3183_v43 = vpop.f32.mrb[15].mxu0  ;;  %v3185_v44 = vpop.f32.mrb[15].mxu1 }
 0x17a   :  { %v3187_v46 = vpop.f32.mrb[16].mxu0  ;;  %v3189_v49 = vpop.f32.mrb[16].mxu1 }
 0x17b   :  { %v3191_v50 = vpop.f32.mrb[17].mxu0  ;;  %v3193_v51 = vpop.f32.mrb[17].mxu1 }
 0x17e   :  { %v3195_v15 = vpop.f32.mrb[18].mxu0  ;;  %v3197_v20 = vpop.f32.mrb[18].mxu1 }
 0x17f   :  { %v3199_v21 = vpop.f32.mrb[19].mxu0  ;;  %v3201_v24 = vpop.f32.mrb[19].mxu1 }
 0x182   :  { %v3203_v31 = vpop.f32.mrb[20].mxu0  ;;  %v3205_v32 = vpop.f32.mrb[20].mxu1 }
 0x183   :  { %v3207_v39 = vpop.f32.mrb[21].mxu0  ;;  %v3209_v40 = vpop.f32.mrb[21].mxu1 }
 0x186   :  { %v3211_v47 = vpop.f32.mrb[22].mxu0  ;;  %v3213_v48 = vpop.f32.mrb[22].mxu1 }
 0x187   :  { %3679 = vst [vmem:[#allocation2_spill] sm:$0xff] %v3211_v47  ;;  %3680 = vst [vmem:[#allocation3_spill] sm:$0xff] %v3213_v48  ;;  %v3215_v52 = vpop.f32.mrb[23].mxu0  ;;  %v3217_v53 = vpop.f32.mrb[23].mxu1 }
 0x188   :  { %3681 = vst [vmem:[#allocation4_spill] sm:$0xff] %v3217_v53 }
 0x18a   :  { %v3219_v54 = vpop.f32.mrb[24].mxu0  ;;  %v3221_v55 = vpop.f32.mrb[24].mxu1 }
 0x18b   :  { %3682 = vst [vmem:[#allocation5_spill] sm:$0xff] %v3219_v54  ;;  %3683 = vst [vmem:[#allocation6_spill] sm:$0xff] %v3221_v55  ;;  %v3223_v56 = vpop.f32.mrb[25].mxu0  ;;  %v3225_v57 = vpop.f32.mrb[25].mxu1 }
 0x18c   :  { %3684 = vst [vmem:[#allocation7_spill] sm:$0xff] %v3223_v56  ;;  %3685 = vst [vmem:[#allocation8_spill] sm:$0xff] %v3225_v57 }
 0x18e   :  { %v3227_v58 = vpop.f32.mrb[26].mxu0  ;;  %v3229_v59 = vpop.f32.mrb[26].mxu1 }
 0x18f   :  { %3686 = vst [vmem:[#allocation9_spill] sm:$0xff] %v3227_v58  ;;  %3687 = vst [vmem:[#allocation10_spill] sm:$0xff] %v3229_v59  ;;  %v3231_v60 = vpop.f32.mrb[27].mxu0  ;;  %v3233_v61 = vpop.f32.mrb[27].mxu1 }
 0x190   :  { %3688 = vst [vmem:[#allocation11_spill] sm:$0xff] %v3231_v60  ;;  %3689 = vst [vmem:[#allocation12_spill] sm:$0xff] %v3233_v61 }
 0x192   :  { %v3235_v62 = vpop.f32.mrb[28].mxu0  ;;  %v3237_v63 = vpop.f32.mrb[28].mxu1 }
 0x193   :  { %3690 = vst [vmem:[#allocation13_spill] sm:$0xff] %v3235_v62  ;;  %3691 = vst [vmem:[#allocation14_spill] sm:$0xff] %v3237_v63  ;;  %v3239_v0 = vpop.f32.mrb[29].mxu0  ;;  %v3241_v1 = vpop.f32.mrb[29].mxu1 }
 0x194   :  { %3692 = vst [vmem:[#allocation15_spill] sm:$0xff] %v3239_v0  ;;  %3693 = vst [vmem:[#allocation16_spill] sm:$0xff] %v3241_v1 }
 0x196   :  { %v3243_v2 = vpop.f32.mrb[30].mxu0  ;;  %v3245_v3 = vpop.f32.mrb[30].mxu1 }
 0x197   :  { %3694 = vst [vmem:[#allocation17_spill] sm:$0xff] %v3243_v2  ;;  %3695 = vst [vmem:[#allocation18_spill] sm:$0xff] %v3245_v3  ;;  %v3247_v4 = vpop.f32.mrb[31].mxu0  ;;  %v3249_v5 = vpop.f32.mrb[31].mxu1 }
 0x198   :  { %3696 = vst [vmem:[#allocation19_spill] sm:$0xff] %v3247_v4  ;;  %3697 = vst [vmem:[#allocation20_spill] sm:$0xff] %v3249_v5 }
 0x19a   :  { %v2224_v59 = vpop.f32.mrb[32].mxu0  ;;  %v2280_v58 = vpop.f32.mrb[32].mxu1 }
 0x19b   :  { %v1301_v61 = vmul.f32 %v2224_v59, %v3123_v6  ;;  %v1349_v62 = vmul.f32 %v2224_v59, %v3125_v7  ;;  %v1317_v63 = vmul.f32 %v2280_v58, %v3125_v7  ;;  %v1365_v0 = vmul.f32 %v2280_v58, %v3123_v6  ;;  %v1060_v60 = vpop.f32.mrb[33].mxu0  ;;  %v1221_v1 = vpop.f32.mrb[33].mxu1 }
 0x19c   :  { %v1300_v2 = vmul.f32 %v1060_v60, %v3127_v8  ;;  %v1348_v3 = vmul.f32 %v1060_v60, %v3129_v9  ;;  %v1316_v4 = vmul.f32 %v1221_v1, %v3129_v9  ;;  %v1364_v5 = vmul.f32 %v1221_v1, %v3127_v8 }
 0x19d   :  { %v1333_v55 = vadd.f32 %v1317_v63, %v1301_v61  ;;  %v1381_v54 = vsub.f32 %v1349_v62, %v1365_v0 }
 0x19e   :  { %v1332_v57 = vadd.f32 %v1316_v4, %v1300_v2  ;;  %v1380_v56 = vsub.f32 %v1348_v3, %v1364_v5  ;;  %v2227_v48 = vpop.f32.mrb[34].mxu0  ;;  %v2283_v59 = vpop.f32.mrb[34].mxu1 }
 0x19f   :  { %v1303_v7 = vmul.f32 %v2227_v48, %v3131_v10  ;;  %v1351_v6 = vmul.f32 %v2227_v48, %v3133_v11  ;;  %v1319_v58 = vmul.f32 %v2283_v59, %v3133_v11  ;;  %v1367_v47 = vmul.f32 %v2283_v59, %v3131_v10  ;;  %v1070_v60 = vpop.f32.mrb[35].mxu0  ;;  %v1231_v53 = vpop.f32.mrb[35].mxu1 }
 0x1a0   :  { %v1302_v9 = vmul.f32 %v1070_v60, %v3135_v12  ;;  %v1350_v8 = vmul.f32 %v1070_v60, %v3137_v13  ;;  %v1318_v61 = vmul.f32 %v1231_v53, %v3137_v13  ;;  %v1366_v62 = vmul.f32 %v1231_v53, %v3135_v12 }
 0x1a1   :  { %v3267_v63 = vadd.f32 %v1319_v58, %v1303_v7  ;;  %v3269_v0 = vsub.f32 %v1351_v6, %v1367_v47  ;;  %v1494_v48 = vmul.f32 %v3189_v49, %v1333_v55  ;;  %v1510_v11 = vmul.f32 %v3187_v46, %v1381_v54 }
 0x1a2   :  { %v3273_v1 = vadd.f32 %v1318_v61, %v1302_v9  ;;  %v3275_v10 = vsub.f32 %v1350_v8, %v1366_v62  ;;  %v2230_v2 = vpop.f32.mrb[36].mxu0  ;;  %v2286_v3 = vpop.f32.mrb[36].mxu1  ;;  %v1397_v4 = vmul.f32 %v3187_v46, %v1333_v55  ;;  %v1413_v13 = vmul.f32 %v3189_v49, %v1381_v54 }
 0x1a3   :  { %v1305_v12 = vmul.f32 %v2230_v2, %v3139_v42  ;;  %v1353_v53 = vmul.f32 %v2230_v2, %v3141_v14  ;;  %v1321_v47 = vmul.f32 %v2286_v3, %v3141_v14  ;;  %v1369_v5 = vmul.f32 %v2286_v3, %v3139_v42  ;;  %v1080_v59 = vpop.f32.mrb[37].mxu0  ;;  %v1241_v7 = vpop.f32.mrb[37].mxu1 }
 0x1a4   :  { %v1304_v6 = vmul.f32 %v1080_v59, %v3143_v45  ;;  %v1352_v58 = vmul.f32 %v1080_v59, %v3145_v16  ;;  %v1320_v60 = vmul.f32 %v1241_v7, %v3145_v16  ;;  %v1368_v46 = vmul.f32 %v1241_v7, %v3143_v45 }
 0x1a5   :  { %v3287_v55 = vadd.f32 %v1321_v47, %v1305_v12  ;;  %v3289_v49 = vsub.f32 %v1353_v53, %v1369_v5  ;;  %v1526_v54 = vadd.f32 %v1510_v11, %v1494_v48  ;;  %v1429_v9 = vsub.f32 %v1397_v4, %v1413_v13 }
 0x1a6   :  { %v3291_v8 = vadd.f32 %v1320_v60, %v1304_v6  ;;  %v3293_v14 = vsub.f32 %v1352_v58, %v1368_v46  ;;  %v2233_v42 = vpop.f32.mrb[38].mxu0  ;;  %v2289_v61 = vpop.f32.mrb[38].mxu1  ;;  %v1493_v62 = vmul.f32 %v1332_v57, %v3193_v51  ;;  %v1509_v2 = vmul.f32 %v1380_v56, %v3191_v50 }
 0x1a7   :  { %v1544_v16 = vsel %vm1444_vm0, %v1526_v54, 0.0  ;;  %v1448_v45 = vsel %vm1444_vm0, %v1429_v9, 0.0  ;;  %v1307_v3 = vmul.f32 %v2233_v42, %v3147_v17  ;;  %v1355_v12 = vmul.f32 %v2233_v42, %v3149_v18  ;;  %v1090_v48 = vpop.f32.mrb[39].mxu0  ;;  %v1251_v11 = vpop.f32.mrb[39].mxu1 }
 0x1a8   :  { %1545 = vadd.xlane.f32.xlu0 %v1544_v16  ;;  %1449 = vadd.xlane.f32.xlu1 %v1448_v45  ;;  %v1323_v4 = vmul.f32 %v2289_v61, %v3149_v18  ;;  %v1371_v13 = vmul.f32 %v2289_v61, %v3147_v17  ;;  %v1306_v53 = vmul.f32 %v1090_v48, %v3151_v19 }
 0x1a9   :  { %v1354_v47 = vmul.f32 %v1090_v48, %v3153_v22  ;;  %v1322_v5 = vmul.f32 %v1251_v11, %v3153_v22  ;;  %v1370_v59 = vmul.f32 %v1251_v11, %v3151_v19  ;;  %v1525_v7 = vadd.f32 %v1509_v2, %v1493_v62 }
 0x1aa   :  { %v3307_v6 = vadd.f32 %v1323_v4, %v1307_v3  ;;  %v3309_v58 = vsub.f32 %v1355_v12, %v1371_v13  ;;  %v1396_v60 = vmul.f32 %v1332_v57, %v3191_v50  ;;  %v1412_v46 = vmul.f32 %v1380_v56, %v3193_v51  ;;  %v2236_v18 = vpop.f32.mrb[40].mxu0  ;;  %v2292_v54 = vpop.f32.mrb[40].mxu1 }
 0x1ab   :  { %v3313_v17 = vadd.f32 %v1322_v5, %v1306_v53  ;;  %v3315_v9 = vsub.f32 %v1354_v47, %v1370_v59  ;;  %v1541_v42 = vsel %vm1444_vm0, %v1525_v7, 0.0  ;;  %v1309_v22 = vmul.f32 %v2236_v18, %v3155_v23  ;;  %v1100_v19 = vpop.f32.mrb[41].mxu0  ;;  %v1261_v61 = vpop.f32.mrb[41].mxu1 }
 0x1ac   :  { %1542 = vadd.xlane.f32.xlu1 %v1541_v42  ;;  %v1428_v62 = vsub.f32 %v1396_v60, %v1412_v46  ;;  %v1357_v2 = vmul.f32 %v2236_v18, %v3157_v25  ;;  %v1325_v50 = vmul.f32 %v2292_v54, %v3157_v25  ;;  %v1373_v51 = vmul.f32 %v2292_v54, %v3155_v23 }
 0x1ad   :  { %v1308_v56 = vmul.f32 %v1100_v19, %v3159_v26  ;;  %v1356_v57 = vmul.f32 %v1100_v19, %v3161_v27  ;;  %v1324_v16 = vmul.f32 %v1261_v61, %v3161_v27  ;;  %v1372_v45 = vmul.f32 %v1261_v61, %v3159_v26 }
 0x1ae   :  { %v1445_v3 = vsel %vm1444_vm0, %v1428_v62, 0.0  ;;  %v3327_v12 = vadd.f32 %v1325_v50, %v1309_v22  ;;  %v3329_v48 = vsub.f32 %v1357_v2, %v1373_v51  ;;  %v1399_v11 = vmul.f32 %v3195_v15, %v3267_v63  ;;  %v2239_v25 = vpop.f32.mrb[42].mxu0  ;;  %v2295_v4 = vpop.f32.mrb[42].mxu1 }
 0x1af   :  { %1446 = vadd.xlane.f32.xlu0 %v1445_v3  ;;  %v3333_v23 = vadd.f32 %v1324_v16, %v1308_v56  ;;  %v3335_v13 = vsub.f32 %v1356_v57, %v1372_v45  ;;  %v1415_v27 = vmul.f32 %v3197_v20, %v3269_v0  ;;  %v1495_v26 = vmul.f32 %v3273_v1, %v3201_v24  ;;  %v1110_v53 = vpop.f32.mrb[43].mxu0  ;;  %v1271_v47 = vpop.f32.mrb[43].mxu1 }
 0x1b0   :  { %v1511_v5 = vmul.f32 %v3275_v10, %v3199_v21  ;;  %v1311_v59 = vmul.f32 %v2239_v25, %v3163_v28  ;;  %v1359_v7 = vmul.f32 %v2239_v25, %v3165_v29  ;;  %v1327_v60 = vmul.f32 %v2295_v4, %v3165_v29 }
 0x1b1   :  { %v1431_v46 = vsub.f32 %v1399_v11, %v1415_v27  ;;  %v1375_v18 = vmul.f32 %v2295_v4, %v3163_v28  ;;  %v1310_v54 = vmul.f32 %v1110_v53, %v3167_v30  ;;  %v1358_v42 = vmul.f32 %v1110_v53, %v3169_v33 }
 0x1b2   :  { %v1527_v22 = vadd.f32 %v1511_v5, %v1495_v26  ;;  %v3349_v19 = vadd.f32 %v1327_v60, %v1311_v59  ;;  %v1326_v61 = vmul.f32 %v1271_v47, %v3169_v33  ;;  %v1374_v62 = vmul.f32 %v1271_v47, %v3167_v30  ;;  %v2242_v2 = vpop.f32.mrb[44].mxu0  ;;  %v2298_v50 = vpop.f32.mrb[44].mxu1 }
 0x1b3   :  { %v1454_v51 = vsel %vm1444_vm0, %v1431_v46, 0.0  ;;  %v3354_v56 = vsub.f32 %v1359_v7, %v1375_v18  ;;  %v1496_v28 = vmul.f32 %v3197_v20, %v3267_v63  ;;  %v1512_v29 = vmul.f32 %v3195_v15, %v3269_v0  ;;  %v1120_v57 = vpop.f32.mrb[45].mxu0  ;;  %v1281_v16 = vpop.f32.mrb[45].mxu1 }
 0x1b4   :  { %1455 = vadd.xlane.f32.xlu0 %v1454_v51  ;;  %v1547_v45 = vsel %vm1444_vm0, %v1527_v22, 0.0  ;;  %v3361_v33 = vadd.f32 %v1326_v61, %v1310_v54  ;;  %v3363_v30 = vsub.f32 %v1358_v42, %v1374_v62  ;;  %v1400_v3 = vmul.f32 %v3291_v8, %v3207_v39 }
 0x1b5   :  { %1548 = vadd.xlane.f32.xlu1 %v1547_v45  ;;  %v1528_v11 = vadd.f32 %v1512_v29, %v1496_v28  ;;  %v1416_v20 = vmul.f32 %v3293_v14, %v3209_v40  ;;  %v1313_v63 = vmul.f32 %v2242_v2, %v3171_v34  ;;  %v1361_v15 = vmul.f32 %v2242_v2, %v3173_v35  ;;  %v3698_v45 = vld [vmem:[#allocation4_spill] sm:$0xff] }
 0x1b6   :  { %v1329_v0 = vmul.f32 %v2298_v50, %v3173_v35  ;;  %v1377_v25 = vmul.f32 %v2298_v50, %v3171_v34  ;;  %v1312_v4 = vmul.f32 %v1120_v57, %v3175_v36  ;;  %v1360_v27 = vmul.f32 %v1120_v57, %v3177_v37  ;;  %v2245_v26 = vpop.f32.mrb[46].mxu0  ;;  %v2301_v53 = vpop.f32.mrb[46].mxu1 }
 0x1b7   :  { %v1550_v47 = vsel %vm1444_vm0, %v1528_v11, 0.0  ;;  %v1432_v5 = vsub.f32 %v1400_v3, %v1416_v20  ;;  %v1328_v59 = vmul.f32 %v1281_v16, %v3177_v37  ;;  %v1376_v7 = vmul.f32 %v1281_v16, %v3175_v36  ;;  %v1130_v60 = vpop.f32.mrb[47].mxu0  ;;  %v1291_v46 = vpop.f32.mrb[47].mxu1 }
 0x1b8   :  { %1551 = vadd.xlane.f32.xlu0 %v1550_v47  ;;  %v3378_v18 = vadd.f32 %v1329_v0, %v1313_v63  ;;  %v3380_v35 = vsub.f32 %v1361_v15, %v1377_v25  ;;  %v1398_v34 = vmul.f32 %v3273_v1, %v3199_v21  ;;  %v1414_v54 = vmul.f32 %v3275_v10, %v3201_v24  ;;  %v3699_v0 = vld [vmem:[#allocation2_spill] sm:$0xff] }
 0x1b9   :  { %v1457_v42 = vsel %vm1444_vm0, %v1432_v5, 0.0  ;;  %v3387_v22 = vadd.f32 %v1328_v59, %v1312_v4  ;;  %v3389_v37 = vsub.f32 %v1360_v27, %v1376_v7  ;;  %v1497_v36 = vmul.f32 %v3291_v8, %v3209_v40  ;;  %v3700_v4 = vld [vmem:[#allocation3_spill] sm:$0xff] }
 0x1ba   :  { %1458 = vadd.xlane.f32.xlu1 %v1457_v42  ;;  %v1430_v61 = vsub.f32 %v1398_v34, %v1414_v54  ;;  %v1513_v62 = vmul.f32 %v3293_v14, %v3207_v39  ;;  %v1315_v2 = vmul.f32 %v2245_v26, %v3179_v38  ;;  %v1363_v21 = vmul.f32 %v2245_v26, %v3181_v41  ;;  %v3703_v42 = vld [vmem:[#allocation5_spill] sm:$0xff] }
 0x1bb   :  { %v1331_v24 = vmul.f32 %v2301_v53, %v3181_v41  ;;  %v1379_v1 = vmul.f32 %v2301_v53, %v3179_v38  ;;  %v1314_v10 = vmul.f32 %v1130_v60, %v3183_v43  ;;  %v1362_v50 = vmul.f32 %v1130_v60, %v3185_v44 }
 0x1bc   :  { %v1451_v51 = vsel %vm1444_vm0, %v1430_v61, 0.0  ;;  %v1529_v40 = vadd.f32 %v1513_v62, %v1497_v36  ;;  %v1330_v8 = vmul.f32 %v1291_v46, %v3185_v44  ;;  %v1378_v28 = vmul.f32 %v1291_v46, %v3183_v43  ;;  %v3705_v62 = vld [vmem:[#allocation11_spill] sm:$0xff] }
 0x1bd   :  { %1452 = vadd.xlane.f32.xlu0 %v1451_v51  ;;  %v3404_v39 = vadd.f32 %v1331_v24, %v1315_v2  ;;  %v3406_v14 = vsub.f32 %v1363_v21, %v1379_v1  ;;  %v1401_v41 = vmul.f32 %v3203_v31, %v3287_v55  ;;  %v1417_v38 = vmul.f32 %v3205_v32, %v3289_v49 }
 0x1be   :  { %v1553_v29 = vsel %vm1444_vm0, %v1529_v40, 0.0  ;;  %v3413_v57 = vadd.f32 %v1330_v8, %v1314_v10  ;;  %v3415_v16 = vsub.f32 %v1362_v50, %v1378_v28  ;;  %v1402_v43 = vmul.f32 %v3313_v17, %v3215_v52  ;;  %v3707_v8 = vld [vmem:[#allocation9_spill] sm:$0xff] }
 0x1bf   :  { %1554 = vadd.xlane.f32.xlu1 %v1553_v29  ;;  %v1433_v44 = vsub.f32 %v1401_v41, %v1417_v38  ;;  %v1418_v3 = vmul.f32 %v3315_v9, %v3698_v45  ;;  %v1498_v11 = vmul.f32 %v3205_v32, %v3287_v55  ;;  %v1514_v20 = vmul.f32 %v3203_v31, %v3289_v49  ;;  %v3701_v32 = vld [vmem:[#allocation7_spill] sm:$0xff]  ;;  %v3708_v38 = vld [vmem:[#allocation10_spill] sm:$0xff] }
 0x1c0   :  { %v1499_v63 = vmul.f32 %v3313_v17, %v3698_v45  ;;  %v1515_v15 = vmul.f32 %v3315_v9, %v3215_v52  ;;  %v1403_v25 = vmul.f32 %v3699_v0, %v3307_v6  ;;  %v1419_v27 = vmul.f32 %v3700_v4, %v3309_v58  ;;  %v3702_v17 = vld [vmem:[#allocation8_spill] sm:$0xff] }
 0x1c1   :  { %v1460_v26 = vsel %vm1444_vm0, %v1433_v44, 0.0  ;;  %v1434_v53 = vsub.f32 %v1402_v43, %v1418_v3  ;;  %v1530_v47 = vadd.f32 %v1514_v20, %v1498_v11  ;;  %v1404_v55 = vmul.f32 %v3333_v23, %v3701_v32  ;;  %v3709_v43 = vld [vmem:[#allocation15_spill] sm:$0xff] }
 0x1c2   :  { %1461 = vadd.xlane.f32.xlu0 %v1460_v26  ;;  %v1531_v31 = vadd.f32 %v1515_v15, %v1499_v63  ;;  %v1435_v49 = vsub.f32 %v1403_v25, %v1419_v27  ;;  %v1420_v5 = vmul.f32 %v3335_v13, %v3702_v17  ;;  %v1500_v52 = vmul.f32 %v3700_v4, %v3307_v6  ;;  %v3704_v6 = vld [vmem:[#allocation6_spill] sm:$0xff]  ;;  %v3711_v25 = vld [vmem:[#allocation13_spill] sm:$0xff] }
 0x1c3   :  { %v1463_v9 = vsel %vm1444_vm0, %v1434_v53, 0.0  ;;  %v1516_v59 = vmul.f32 %v3699_v0, %v3309_v58  ;;  %v1501_v7 = vmul.f32 %v3333_v23, %v3702_v17  ;;  %v1556_v60 = vsel %vm1444_vm0, %v1530_v47, 0.0  ;;  %v3706_v23 = vld [vmem:[#allocation12_spill] sm:$0xff]  ;;  %v3712_v26 = vld [vmem:[#allocation14_spill] sm:$0xff]  ;;  %v3713_v47 = vld [vmem:[#allocation19_spill] sm:$0xff] }
 0x1c4   :  { %1464 = vadd.xlane.f32.xlu1 %v1463_v9  ;;  %v1436_v46 = vsub.f32 %v1404_v55, %v1420_v5  ;;  %v1517_v34 = vmul.f32 %v3335_v13, %v3701_v32  ;;  %v1405_v36 = vmul.f32 %v3703_v42, %v3327_v12  ;;  %v1421_v61 = vmul.f32 %v3704_v6, %v3329_v48 }
 0x1c5   :  { %v1532_v54 = vadd.f32 %v1516_v59, %v1500_v52  ;;  %v1406_v58 = vmul.f32 %v3361_v33, %v3705_v62  ;;  %v1422_v21 = vmul.f32 %v3363_v30, %v3706_v23  ;;  %v1502_v24 = vmul.f32 %v3704_v6, %v3327_v12  ;;  %v3715_v59 = vld [vmem:[#allocation17_spill] sm:$0xff] }
 0x1c6   :  { %1557 = vadd.xlane.f32.xlu0 %v1556_v60  ;;  %v1533_v2 = vadd.f32 %v1517_v34, %v1501_v7  ;;  %v1559_v13 = vsel %vm1444_vm0, %v1531_v31, 0.0  ;;  %v1437_v1 = vsub.f32 %v1405_v36, %v1421_v61  ;;  %v1518_v10 = vmul.f32 %v3703_v42, %v3329_v48 }
 0x1c7   :  { %v1503_v50 = vmul.f32 %v3361_v33, %v3706_v23  ;;  %v1438_v51 = vsub.f32 %v1406_v58, %v1422_v21  ;;  %v1519_v40 = vmul.f32 %v3363_v30, %v3705_v62  ;;  %v1407_v28 = vmul.f32 %v3707_v8, %v3349_v19  ;;  %v3710_v33 = vld [vmem:[#allocation16_spill] sm:$0xff] }
 0x1c8   :  { %1560 = vadd.xlane.f32.xlu1 %v1559_v13  ;;  %v1466_v41 = vsel %vm1444_vm0, %v1435_v49, 0.0  ;;  %v1534_v12 = vadd.f32 %v1518_v10, %v1502_v24  ;;  %v1423_v29 = vmul.f32 %v3708_v38, %v3354_v56  ;;  %v1408_v48 = vmul.f32 %v3387_v22, %v3709_v43 }
 0x1c9   :  { %v1535_v44 = vadd.f32 %v1519_v40, %v1503_v50  ;;  %v1424_v45 = vmul.f32 %v3389_v37, %v3710_v33  ;;  %v1504_v30 = vmul.f32 %v3708_v38, %v3349_v19  ;;  %v1469_v3 = vsel %vm1444_vm0, %v1436_v46, 0.0  ;;  %v3716_v46 = vld [vmem:[#allocation18_spill] sm:$0xff] }
 0x1ca   :  { %1467 = vadd.xlane.f32.xlu0 %v1466_v41  ;;  %v1439_v11 = vsub.f32 %v1407_v28, %v1423_v29  ;;  %v1520_v20 = vmul.f32 %v3707_v8, %v3354_v56  ;;  %v1505_v63 = vmul.f32 %v3387_v22, %v3710_v33  ;;  %v1521_v0 = vmul.f32 %v3389_v37, %v3709_v43  ;;  %v3714_v22 = vld [vmem:[#allocation20_spill] sm:$0xff] }
 0x1cb   :  { %v1440_v15 = vsub.f32 %v1408_v48, %v1424_v45  ;;  %v1409_v4 = vmul.f32 %v3711_v25, %v3378_v18  ;;  %v1562_v27 = vsel %vm1444_vm0, %v1532_v54, 0.0  ;;  %v1425_v53 = vmul.f32 %v3712_v26, %v3380_v35 }
 0x1cc   :  { %1470 = vadd.xlane.f32.xlu1 %v1469_v3  ;;  %v1536_v19 = vadd.f32 %v1520_v20, %v1504_v30  ;;  %v1410_v56 = vmul.f32 %v3413_v57, %v3713_v47  ;;  %v1537_v32 = vadd.f32 %v1521_v0, %v1505_v63  ;;  %v1426_v55 = vmul.f32 %v3415_v16, %v3714_v22 }
 0x1cd   :  { %v1506_v37 = vmul.f32 %v3712_v26, %v3378_v18  ;;  %v1565_v31 = vsel %vm1444_vm0, %v1533_v2, 0.0  ;;  %v1441_v49 = vsub.f32 %v1409_v4, %v1425_v53  ;;  %v1522_v17 = vmul.f32 %v3711_v25, %v3380_v35 }
 0x1ce   :  { %1563 = vadd.xlane.f32.xlu0 %v1562_v27  ;;  %v1507_v5 = vmul.f32 %v3413_v57, %v3714_v22  ;;  %v1442_v52 = vsub.f32 %v1410_v56, %v1426_v55  ;;  %v1523_v9 = vmul.f32 %v3415_v16, %v3713_v47  ;;  %v1411_v7 = vmul.f32 %v3715_v59, %v3404_v39 }
 0x1cf   :  { %v1472_v60 = vsel %vm1444_vm0, %v1437_v1, 0.0  ;;  %v1538_v18 = vadd.f32 %v1522_v17, %v1506_v37  ;;  %v1427_v34 = vmul.f32 %v3716_v46, %v3406_v14  ;;  %v1508_v35 = vmul.f32 %v3716_v46, %v3404_v39 }
 0x1d0   :  { %1566 = vadd.xlane.f32.xlu1 %v1565_v31  ;;  %v1539_v54 = vadd.f32 %v1523_v9, %v1507_v5  ;;  %v1524_v57 = vmul.f32 %v3715_v59, %v3406_v14  ;;  %v1475_v42 = vsel %vm1444_vm0, %v1438_v51, 0.0  ;;  %v1568_v61 = vsel %vm1444_vm0, %v1534_v12, 0.0 }
 0x1d1   :  { %v1443_v16 = vsub.f32 %v1411_v7, %v1427_v34  ;;  %v1571_v39 = vsel %vm1444_vm0, %v1535_v44, 0.0  ;;  %v1478_v2 = vsel %vm1444_vm0, %v1439_v11, 0.0  ;;  %v1481_v14 = vsel %vm1444_vm0, %v1440_v15, 0.0 }
 0x1d2   :  { %1473 = vadd.xlane.f32.xlu0 %v1472_v60  ;;  %v1583_v36 = vsel %vm1444_vm0, %v1539_v54, 0.0  ;;  %v1540_v6 = vadd.f32 %v1524_v57, %v1508_v35  ;;  %v1574_v23 = vsel %vm1444_vm0, %v1536_v19, 0.0  ;;  %v1577_v21 = vsel %vm1444_vm0, %v1537_v32, 0.0 }
 0x1d3   :  { %v1490_v62 = vsel %vm1444_vm0, %v1443_v16, 0.0  ;;  %v1484_v24 = vsel %vm1444_vm0, %v1441_v49, 0.0  ;;  %v1487_v13 = vsel %vm1444_vm0, %v1442_v52, 0.0  ;;  %v1580_v1 = vsel %vm1444_vm0, %v1538_v18, 0.0 }
 0x1d4   :  { %1476 = vadd.xlane.f32.xlu1 %v1475_v42  ;;  %v1586_v58 = vsel %vm1444_vm0, %v1540_v6, 0.0 }
 0x1d6   :  { %1569 = vadd.xlane.f32.xlu0 %v1568_v61 }
 0x1d8   :  { %1572 = vadd.xlane.f32.xlu1 %v1571_v39 }
 0x1da   :  { %1479 = vadd.xlane.f32.xlu0 %v1478_v2 }
 0x1dc   :  { %1482 = vadd.xlane.f32.xlu1 %v1481_v14 }
 0x1de   :  { %1575 = vadd.xlane.f32.xlu0 %v1574_v23 }
 0x1e0   :  { %1578 = vadd.xlane.f32.xlu1 %v1577_v21 }
 0x1e2   :  { %1485 = vadd.xlane.f32.xlu0 %v1484_v24 }
 0x1e4   :  { %1488 = vadd.xlane.f32.xlu1 %v1487_v13 }
 0x1e6   :  { %1581 = vadd.xlane.f32.xlu0 %v1580_v1 }
 0x1e8   :  { %1584 = vadd.xlane.f32.xlu1 %v1583_v36 }
 0x1ea   :  { %1491 = vadd.xlane.f32.xlu0 %v1490_v62 }
 0x1ee   :  { %1587 = vadd.xlane.f32.xlu0 %v1586_v58 }
 0x235   :  { %v1450_v10 = vpop.xlane.xlu1 %1449  ;;  %v1546_v50 = vpop.xlane.xlu0 %1545 }
 0x236   :  { %1591 = vst.msk [vmem:[%s3658_s7 + $0x8] sm:$0xff] %vm1589_vm1, %v1450_v10  ;;  %1607 = vst.msk [vmem:[%s3659_s8 + $0x8] sm:$0xff] %vm1589_vm1, %v1546_v50 }
 0x239   :  { %v1543_v51 = vpop.xlane.xlu1 %1542 }
 0x23a   :  { %1606 = vst.msk [vmem:[%s3659_s8] sm:$0xff] %vm1589_vm1, %v1543_v51 }
 0x23c   :  { %v1447_v40 = vpop.xlane.xlu0 %1446 }
 0x23d   :  { %1590 = vst.msk [vmem:[%s3658_s7] sm:$0xff] %vm1589_vm1, %v1447_v40 }
 0x241   :  { %v1456_v8 = vpop.xlane.xlu0 %1455 }
 0x242   :  { %v1549_v28 = vpop.xlane.xlu1 %1548  ;;  %1593 = vst.msk [vmem:[%s3658_s7 + $0x18] sm:$0xff] %vm1589_vm1, %v1456_v8 }
 0x243   :  { %1608 = vst.msk [vmem:[%s3659_s8 + $0x10] sm:$0xff] %vm1589_vm1, %v1549_v28 }
 0x245   :  { %v1552_v41 = vpop.xlane.xlu0 %1551 }
 0x246   :  { %1609 = vst.msk [vmem:[%s3659_s8 + $0x18] sm:$0xff] %vm1589_vm1, %v1552_v41 }
 0x247   :  { %v1459_v12 = vpop.xlane.xlu1 %1458 }
 0x248   :  { %1594 = vst.msk [vmem:[%s3658_s7 + $0x20] sm:$0xff] %vm1589_vm1, %v1459_v12 }
 0x24a   :  { %v1453_v38 = vpop.xlane.xlu0 %1452 }
 0x24b   :  { %1592 = vst.msk [vmem:[%s3658_s7 + $0x10] sm:$0xff] %vm1589_vm1, %v1453_v38 }
 0x24c   :  { %v1555_v29 = vpop.xlane.xlu1 %1554 }
 0x24d   :  { %1610 = vst.msk [vmem:[%s3659_s8 + $0x20] sm:$0xff] %vm1589_vm1, %v1555_v29 }
 0x24f   :  { %v1462_v43 = vpop.xlane.xlu0 %1461 }
 0x250   :  { %1595 = vst.msk [vmem:[%s3658_s7 + $0x28] sm:$0xff] %vm1589_vm1, %v1462_v43 }
 0x251   :  { %v1465_v48 = vpop.xlane.xlu1 %1464 }
 0x252   :  { %1596 = vst.msk [vmem:[%s3658_s7 + $0x30] sm:$0xff] %vm1589_vm1, %v1465_v48 }
 0x253   :  { %v1558_v44 = vpop.xlane.xlu0 %1557 }
 0x254   :  { %1611 = vst.msk [vmem:[%s3659_s8 + $0x28] sm:$0xff] %vm1589_vm1, %v1558_v44 }
 0x255   :  { %v1561_v33 = vpop.xlane.xlu1 %1560 }
 0x256   :  { %1612 = vst.msk [vmem:[%s3659_s8 + $0x30] sm:$0xff] %vm1589_vm1, %v1561_v33 }
 0x257   :  { %v1468_v45 = vpop.xlane.xlu0 %1467 }
 0x258   :  { %1597 = vst.msk [vmem:[%s3658_s7 + $0x38] sm:$0xff] %vm1589_vm1, %v1468_v45 }
 0x259   :  { %v1471_v30 = vpop.xlane.xlu1 %1470 }
 0x25a   :  { %1598 = vst.msk [vmem:[%s3658_s7 + $0x40] sm:$0xff] %vm1589_vm1, %v1471_v30 }
 0x25b   :  { %v1564_v3 = vpop.xlane.xlu0 %1563 }
 0x25c   :  { %1613 = vst.msk [vmem:[%s3659_s8 + $0x38] sm:$0xff] %vm1589_vm1, %v1564_v3 }
 0x25d   :  { %v1567_v11 = vpop.xlane.xlu1 %1566 }
 0x25e   :  { %1614 = vst.msk [vmem:[%s3659_s8 + $0x40] sm:$0xff] %vm1589_vm1, %v1567_v11 }
 0x25f   :  { %v1474_v20 = vpop.xlane.xlu0 %1473 }
 0x260   :  { %1599 = vst.msk [vmem:[%s3658_s7 + $0x48] sm:$0xff] %vm1589_vm1, %v1474_v20 }
 0x261   :  { %v1477_v63 = vpop.xlane.xlu1 %1476 }
 0x262   :  { %1600 = vst.msk [vmem:[%s3658_s7 + $0x50] sm:$0xff] %vm1589_vm1, %v1477_v63 }
 0x263   :  { %v1570_v15 = vpop.xlane.xlu0 %1569 }
 0x264   :  { %1615 = vst.msk [vmem:[%s3659_s8 + $0x48] sm:$0xff] %vm1589_vm1, %v1570_v15 }
 0x265   :  { %v1573_v0 = vpop.xlane.xlu1 %1572 }
 0x266   :  { %1616 = vst.msk [vmem:[%s3659_s8 + $0x50] sm:$0xff] %vm1589_vm1, %v1573_v0 }
 0x267   :  { %v1480_v25 = vpop.xlane.xlu0 %1479 }
 0x268   :  { %1601 = vst.msk [vmem:[%s3658_s7 + $0x58] sm:$0xff] %vm1589_vm1, %v1480_v25 }
 0x269   :  { %v1483_v4 = vpop.xlane.xlu1 %1482 }
 0x26a   :  { %1602 = vst.msk [vmem:[%s3658_s7 + $0x60] sm:$0xff] %vm1589_vm1, %v1483_v4 }
 0x26b   :  { %v1576_v27 = vpop.xlane.xlu0 %1575 }
 0x26c   :  { %1617 = vst.msk [vmem:[%s3659_s8 + $0x58] sm:$0xff] %vm1589_vm1, %v1576_v27 }
 0x26d   :  { %v1579_v19 = vpop.xlane.xlu1 %1578 }
 0x26e   :  { %1618 = vst.msk [vmem:[%s3659_s8 + $0x60] sm:$0xff] %vm1589_vm1, %v1579_v19 }
 0x26f   :  { %v1486_v26 = vpop.xlane.xlu0 %1485 }
 0x270   :  { %1603 = vst.msk [vmem:[%s3658_s7 + $0x68] sm:$0xff] %vm1589_vm1, %v1486_v26 }
 0x271   :  { %v1489_v53 = vpop.xlane.xlu1 %1488 }
 0x272   :  { %1604 = vst.msk [vmem:[%s3658_s7 + $0x70] sm:$0xff] %vm1589_vm1, %v1489_v53 }
 0x273   :  { %v1582_v47 = vpop.xlane.xlu0 %1581 }
 0x274   :  { %1619 = vst.msk [vmem:[%s3659_s8 + $0x68] sm:$0xff] %vm1589_vm1, %v1582_v47 }
 0x275   :  { %v1585_v56 = vpop.xlane.xlu1 %1584 }
 0x276   :  { %1620 = vst.msk [vmem:[%s3659_s8 + $0x70] sm:$0xff] %vm1589_vm1, %v1585_v56 }
 0x277   :  { %v1492_v32 = vpop.xlane.xlu0 %1491 }
 0x278   :  { %1605 = vst.msk [vmem:[%s3658_s7 + $0x78] sm:$0xff] %vm1589_vm1, %v1492_v32 }
 0x27b   :  { %v1588_v22 = vpop.xlane.xlu0 %1587 }
 0x27c   :  { %1621 = vst.msk [vmem:[%s3659_s8 + $0x78] sm:$0xff] %vm1589_vm1, %v1588_v22 }

</bundles_post_ra>
